<compile_context>
chip_gen: v5e
topology: v5e:2x2
jax: 0.10.0
libtpu: 0.0.40
codegen_flags: <defaults>
</compile_context>

<pallas_src>
import functools

import numpy as np
import jax
import jax.numpy as jnp
from jax.experimental import pallas as pl
from jax.experimental.pallas import tpu as pltpu


# --------------------------------- kernel ------------------------------------
def _dcrnn_kernel(x_ref, h_ref, pout_ref, pin_ref,
                  wx_ref, whzr_ref, whc_ref, bzrc_ref,
                  out_ref, *, K, bt, n, f, o):
    """One batch block of the DCRNN cell.

    x_ref   : (bt, n, f)   f32  input features
    h_ref   : (bt, n, o)   f32  previous hidden state (aliased with out_ref)
    pout_ref: (n, n)       f32  forward propagation matrix
    pin_ref : (n, n)       f32  reverse propagation matrix
    wx_ref  : (2K-1, f, 3o)     per-term X-part weights for [Z | R | C]
    whzr_ref: (2K-1, o, 2o)     per-term H-part weights for [Z | R]
    whc_ref : (2K-1, o, o)      per-term (H*R)-part weights for C
    bzrc_ref: (1, 3o)           fused bias [bz | br | bh]
    out_ref : (bt, n, o)   f32  new hidden state
    """
    P_out = pout_ref[...]
    P_in = pin_ref[...]
    bias = bzrc_ref[...]

    def mm(a, b):
        return jnp.dot(a, b, preferred_element_type=jnp.float32)

    def to_rows(u, c):
        # lane-stacked (n, bt*c) -> batch-on-sublanes (bt*n, c); n % 8 == 0 keeps the
        # sublane concat tile aligned.
        return jnp.concatenate([u[:, b * c:(b + 1) * c] for b in range(bt)], axis=0)

    def to_lanes(v, c):
        # batch-on-sublanes (bt*n, c) -> lane-stacked (n, bt*c)
        return jnp.concatenate([v[b * n:(b + 1) * n, :] for b in range(bt)], axis=1)

    def dconv_gate(u, c, w_ref):
        """Diffusion recurrence on the lane-stacked input u (n, bt*c) with per-term
        gate matmuls against the shared (c, out) weights, accumulated in f32.
        No term stack is materialized.
        NB: T0 deliberately stays == u for every k >= 2 (upstream DConv quirk where
        Tx_1 (== X) is never updated, so Tx_0 is X for all k)."""
        acc = mm(to_rows(u, c), w_ref[0])
        if K > 1:
            t_o = mm(P_out, u)
            t_i = mm(P_in, u)
            acc = acc + mm(to_rows(t_o, c), w_ref[1]) + mm(to_rows(t_i, c), w_ref[2])
            for k in range(2, K):
                t_o = 2.0 * mm(P_out, t_o) - u
                t_i = 2.0 * mm(P_in, t_i) - u
                acc = acc + mm(to_rows(t_o, c), w_ref[2 * k - 1])
                acc = acc + mm(to_rows(t_i, c), w_ref[2 * k])
        return acc

    # batch-block inputs -> working layouts (lane-stacked for diffusion,
    # batch-on-sublanes for the gate matmuls / elementwise GRU update)
    Xl = jnp.concatenate([x_ref[b] for b in range(bt)], axis=1)     # (n, bt*f)
    Hl = jnp.concatenate([h_ref[b] for b in range(bt)], axis=1)     # (n, bt*o)
    Hs = jnp.concatenate([h_ref[b] for b in range(bt)], axis=0)     # (bt*n, o)

    gx = dconv_gate(Xl, f, wx_ref)          # (bt*n, 3o)  X part of  [Z | R | C]
    gh = dconv_gate(Hl, o, whzr_ref)        # (bt*n, 2o)  H part of  [Z | R]

    zr = jax.nn.sigmoid(gx[:, :2 * o] + gh + bias[:, :2 * o])
    Z = zr[:, :o]
    R = zr[:, o:]

    # candidate state: only the (H*R) side needs new diffusion; X side already in gx.
    ghr = dconv_gate(to_lanes(Hs * R, o), o, whc_ref)               # (bt*n, o)
    h_tilde = jnp.tanh(gx[:, 2 * o:] + ghr + bias[:, 2 * o:])

    H_new = Z * Hs + (1.0 - Z) * h_tilde                            # (bt*n, o) f32
    for b in range(bt):
        out_ref[b] = H_new[b * n:(b + 1) * n, :]


# ------------------------ host-side weight / layout plumbing ------------------
def _per_term_weights(W):
    # (2, K, Din, O) -> (2K-1, Din, O), ordered to match the kernel's term order:
    # [W[0,0] + W[1,0], W[0,1], W[1,1], W[0,2], W[1,2], ...]
    K = W.shape[1]
    mats = [W[0, 0] + W[1, 0]]
    for k in range(1, K):
        mats.append(W[0, k])
        mats.append(W[1, k])
    return jnp.stack(mats, axis=0)


@jax.jit
def dcrnn_layer_pallas(X, H, P_out, P_in, Wz, bz, Wr, br, Wh, bh):
    B, N, F = X.shape
    O = H.shape[-1]
    K = Wz.shape[1]
    T = 2 * K - 1

    # --- node-dim padding: multiple of 8 keeps batch row-slabs and the (n,bt,c)
    #     re-layouts tile aligned (round further up to 128 at production N to also
    #     align the P contraction panels for the v6e/v7x MXU).
    Np = ((N + 7) // 8) * 8
    pad = Np - N
    Xp = jnp.pad(X.astype(jnp.float32), ((0, 0), (0, pad), (0, 0)))
    Hp = jnp.pad(H.astype(jnp.float32), ((0, 0), (0, pad), (0, 0)))
    Pof = jnp.pad(P_out.astype(jnp.float32), ((0, pad), (0, pad)))
    Pif = jnp.pad(P_in.astype(jnp.float32), ((0, pad), (0, pad)))

    # --- per-term weights, split into X-part / H-part rows, gates fused host-side:
    #     wx (T,F,3O) -> [Z|R|C] from X, whzr (T,O,2O) -> [Z|R] from H, whc (T,O,O) -> C from H*R
    Wzt = _per_term_weights(Wz)
    Wrt = _per_term_weights(Wr)
    Wct = _per_term_weights(Wh)
    wx = jnp.concatenate([Wzt[:, :F], Wrt[:, :F], Wct[:, :F]], axis=-1).astype(jnp.float32)
    whzr = jnp.concatenate([Wzt[:, F:], Wrt[:, F:]], axis=-1).astype(jnp.float32)
    whc = Wct[:, F:].astype(jnp.float32)
    bzrc = jnp.concatenate([bz.reshape(1, O), br.reshape(1, O),
                            bh.reshape(1, O)], axis=-1).astype(jnp.float32)

    # --- batch blocking: 2 blocks when possible (one per TensorCore on v7x via the
    #     "parallel" grid axis); on single-core v5e/v6e the steps run back to back.
    nb = 2 if (B % 2 == 0 and B > 1) else 1
    bt = B // nb

    operands = (Xp, Hp, Pof, Pif, wx, whzr, whc, bzrc)

    # --- VMEM budget: derived from operands + headroom, clamped to ~80% of the chip's
    #     capacity (64 MiB/TC on v7x, 128 MiB on v5e/v6e) instead of a hard-coded 64 MiB.
    op_bytes = sum(int(np.prod(a.shape)) * a.dtype.itemsize for a in operands)
    try:
        cap = int(pltpu.get_tpu_info().vmem_capacity_bytes)
    except Exception:
        cap = 64 * 1024 * 1024
    vmem_limit = int(min(max(4 * op_bytes + (8 << 20), 32 << 20), int(0.8 * cap)))

    def invariant_spec(shape):
        # grid-invariant operand: constant index_map + single buffering (there is
        # nothing to pipeline across grid steps -> halves its resident VMEM footprint).
        nd = len(shape)
        idx = lambda *_: (0,) * nd
        try:
            return pl.BlockSpec(shape, idx, pipeline_mode=pl.Buffered(1))
        except (TypeError, AttributeError):   # older jax without pipeline_mode
            return pl.BlockSpec(shape, idx)

    in_specs = [
        pl.BlockSpec((bt, Np, F), lambda i: (i, 0, 0)),   # X   (batch-blocked)
        pl.BlockSpec((bt, Np, O), lambda i: (i, 0, 0)),   # H   (batch-blocked, aliased)
        invariant_spec((Np, Np)),                          # P_out
        invariant_spec((Np, Np)),                          # P_in
        invariant_spec((T, F, 3 * O)),                     # wx
        invariant_spec((T, O, 2 * O)),                     # whzr
        invariant_spec((T, O, O)),                         # whc
        invariant_spec((1, 3 * O)),                        # bias
    ]
    out_spec = pl.BlockSpec((bt, Np, O), lambda i: (i, 0, 0))

    kernel = functools.partial(_dcrnn_kernel, K=K, bt=bt, n=Np, f=F, o=O)

    # NOTE(scale): once 2*Np^2 floats no longer fit the VMEM budget (a few thousand
    # nodes), add an "arbitrary" grid axis tiling the contraction (column) dim of
    # P_out/P_in with an f32 accumulator per Chebyshev level; the gate side is unchanged.
    out = pl.pallas_call(
        kernel,
        out_shape=jax.ShapeDtypeStruct((B, Np, O), jnp.float32),
        grid_spec=pltpu.PrefetchScalarGridSpec(
            num_scalar_prefetch=0,
            grid=(nb,),
            in_specs=in_specs,
            out_specs=out_spec,
        ),
        input_output_aliases={1: 0},   # new hidden state overwrites the old one
        compiler_params=pltpu.CompilerParams(
            dimension_semantics=("parallel",),
            vmem_limit_bytes=vmem_limit),
    )(*operands)

    return out[:, :N, :]


# ------------------------ host-side graph preprocessing ----------------------
def build_propagation_matrices(edge_index, edge_weight, num_nodes):
    """Reproduces DConv.compute_graph_stats + the PyG scatter-add propagate as two dense
    (N, N) matrices so that propagate(x) == P @ x (per batch element)."""
    # TODO(synk): the sparse nonzero / dense_to_sparse / scatter graph preprocessing has
    # no clean Pallas equivalent; it is folded into dense propagation matrices host-side.
    src, tgt = np.asarray(edge_index[0]), np.asarray(edge_index[1])
    ew = np.asarray(edge_weight, dtype=np.float64)
    N = num_nodes
    adj = np.zeros((N, N), dtype=np.float64)
    np.add.at(adj, (src, tgt), ew)                       # to_dense_adj
    deg_out = adj.sum(axis=1)
    deg_in = adj.sum(axis=0)
    deg_out_inv = 1.0 / (deg_out + 1e-8)
    deg_in_inv = 1.0 / (deg_in + 1e-8)
    norm_out = deg_out_inv[src]
    norm_in = deg_in_inv[tgt]
    # forward propagate: out[tgt] += norm_out[e] * x[src]
    P_out = np.zeros((N, N), dtype=np.float64)
    np.add.at(P_out, (tgt, src), norm_out)
    # reverse edges: nonzeros of adj.T in row-major order (== dense_to_sparse ordering),
    # paired positionally with norm_in computed on the ORIGINAL edge order (upstream quirk).
    rev_src, rev_tgt = np.nonzero(adj.T)
    P_in = np.zeros((N, N), dtype=np.float64)
    np.add.at(P_in, (rev_tgt, rev_src), norm_in)
    return P_out.astype(np.float32), P_in.astype(np.float32)


# ------------------------------ numpy reference -------------------------------
def _dconv_ref(Xc, W, b, P_out, P_in):
    K = W.shape[1]
    acc = Xc @ W[0, 0] + Xc @ W[1, 0]
    if K > 1:
        T1o = np.einsum('nm,bmc->bnc', P_out, Xc)
        T1i = np.einsum('nm,bmc->bnc', P_in, Xc)
        acc = acc + T1o @ W[0, 1] + T1i @ W[1, 1]
        T0 = Xc
        for k in range(2, K):
            T2o = 2.0 * np.einsum('nm,bmc->bnc', P_out, T1o) - T0
            T2i = 2.0 * np.einsum('nm,bmc->bnc', P_in, T1i) - T0
            acc = acc + T2o @ W[0, k] + T2i @ W[1, k]
            T0, T1o, T1i = Xc, T2o, T2i
    return acc + b


def _dcrnn_ref(X, H, P_out, P_in, Wz, bz, Wr, br, Wh, bh):
    def sigmoid(v):
        return 1.0 / (1.0 + np.exp(-v))
    XH = np.concatenate([X, H], axis=-1)
    Z = sigmoid(_dconv_ref(XH, Wz, bz, P_out, P_in))
    R = sigmoid(_dconv_ref(XH, Wr, br, P_out, P_in))
    XHR = np.concatenate([X, H * R], axis=-1)
    Ht = np.tanh(_dconv_ref(XHR, Wh, bh, P_out, P_in))
    return Z * H + (1.0 - Z) * Ht


# ----------------------------------- main -------------------------------------
if __name__ == "__main__":
    B, N, F, O, K = 4, 20, 8, 8, 3          # N not a multiple of 8 -> exercises padding
    Din = F + O

    key = jax.random.PRNGKey(0)
    ks = jax.random.split(key, 10)

    X = jax.random.normal(ks[0], (B, N, F), dtype=jnp.float32)
    H0 = 0.5 * jax.random.normal(ks[8], (B, N, O), dtype=jnp.float32)  # hidden state

    # deterministic graph: ring edges i->i+1 plus skip edges i->i+3
    nodes = np.arange(N)
    src = np.concatenate([nodes, nodes])
    tgt = np.concatenate([(nodes + 1) % N, (nodes + 3) % N])
    E = src.shape[0]
    edge_weight = jax.random.uniform(ks[1], (E,), minval=0.5, maxval=1.0,
                                     dtype=jnp.float32)

    P_out, P_in = build_propagation_matrices((src, tgt), np.asarray(edge_weight), N)

    def xavier(k, shape):
        bound = float(np.sqrt(6.0 / (shape[-2] + shape[-1])))
        return jax.random.uniform(k, shape, minval=-bound, maxval=bound,
                                  dtype=jnp.float32)

    Wz = xavier(ks[2], (2, K, Din, O))
    Wr = xavier(ks[4], (2, K, Din, O))
    Wh = xavier(ks[6], (2, K, Din, O))
    bz = 0.1 * jax.random.normal(ks[3], (1, O), dtype=jnp.float32)
    br = 0.1 * jax.random.normal(ks[5], (1, O), dtype=jnp.float32)
    bh = 0.1 * jax.random.normal(ks[7], (1, O), dtype=jnp.float32)

    # float64 reference is computed BEFORE the kernel call (the kernel aliases the
    # padded hidden-state buffer with its output).
    ref = _dcrnn_ref(np.asarray(X, np.float64), np.asarray(H0, np.float64),
                     P_out.astype(np.float64), P_in.astype(np.float64),
                     np.asarray(Wz, np.float64), np.asarray(bz, np.float64),
                     np.asarray(Wr, np.float64), np.asarray(br, np.float64),
                     np.asarray(Wh, np.float64), np.asarray(bh, np.float64))

    out = dcrnn_layer_pallas(X, H0, jnp.asarray(P_out), jnp.asarray(P_in),
                             Wz, bz, Wr, br, Wh, bh)
    out = jax.block_until_ready(out)

    # f32 operands with f32 accumulation throughout -> comfortably within 2e-2 of the
    # float64 reference (tolerance left loose in case the dot runs at reduced precision).
    np.testing.assert_allclose(np.asarray(out), ref, rtol=2e-2, atol=2e-2)
    print("KERNEL_OK")
</pallas_src>

<mosaic_0001>
module attributes {stable_mosaic.version = 11 : i64} {
  func.func @_dcrnn_kernel(%arg0: i32, %arg1: memref<2x24x8xf32, #tpu.memory_space<vmem>>, %arg2: memref<2x24x8xf32, #tpu.memory_space<vmem>>, %arg3: memref<24x24xf32, #tpu.memory_space<vmem>>, %arg4: memref<24x24xf32, #tpu.memory_space<vmem>>, %arg5: memref<5x8x24xf32, #tpu.memory_space<vmem>>, %arg6: memref<5x8x16xf32, #tpu.memory_space<vmem>>, %arg7: memref<5x8x8xf32, #tpu.memory_space<vmem>>, %arg8: memref<1x24xf32, #tpu.memory_space<vmem>>, %arg9: memref<2x24x8xf32, #tpu.memory_space<vmem>>) attributes {dimension_semantics = [#tpu.dimension_semantics<parallel>], iteration_bounds = array<i64: 2>, scalar_prefetch = 0 : i64, scratch_operands = 0 : i64, tpu.core_type = #tpu.core_type<tc>, window_params = [{transform_indices = @transform_0, window_bounds = array<i64: 2, 24, 8>}, {transform_indices = @transform_1, window_bounds = array<i64: 2, 24, 8>}, {pipeline_mode = #tpu.pipeline_mode<synchronous>, transform_indices = @transform_2, window_bounds = array<i64: 24, 24>}, {pipeline_mode = #tpu.pipeline_mode<synchronous>, transform_indices = @transform_3, window_bounds = array<i64: 24, 24>}, {pipeline_mode = #tpu.pipeline_mode<synchronous>, transform_indices = @transform_4, window_bounds = array<i64: 5, 8, 24>}, {pipeline_mode = #tpu.pipeline_mode<synchronous>, transform_indices = @transform_5, window_bounds = array<i64: 5, 8, 16>}, {pipeline_mode = #tpu.pipeline_mode<synchronous>, transform_indices = @transform_6, window_bounds = array<i64: 5, 8, 8>}, {pipeline_mode = #tpu.pipeline_mode<synchronous>, transform_indices = @transform_7, window_bounds = array<i64: 1, 24>}, {transform_indices = @transform_8, window_bounds = array<i64: 2, 24, 8>}]} {
    %c0 = arith.constant 0 : index
    %c0_0 = arith.constant 0 : index
    %0 = vector.load %arg3[%c0, %c0_0] : memref<24x24xf32, #tpu.memory_space<vmem>>, vector<24x24xf32>
    %c0_1 = arith.constant 0 : index
    %c0_2 = arith.constant 0 : index
    %1 = vector.load %arg4[%c0_1, %c0_2] : memref<24x24xf32, #tpu.memory_space<vmem>>, vector<24x24xf32>
    %c0_3 = arith.constant 0 : index
    %c0_4 = arith.constant 0 : index
    %2 = vector.load %arg8[%c0_3, %c0_4] : memref<1x24xf32, #tpu.memory_space<vmem>>, vector<1x24xf32>
    %c0_5 = arith.constant 0 : index
    %c0_6 = arith.constant 0 : index
    %c0_7 = arith.constant 0 : index
    %3 = vector.load %arg1[%c0_5, %c0_6, %c0_7] : memref<2x24x8xf32, #tpu.memory_space<vmem>>, vector<1x24x8xf32>
    %4 = vector.shape_cast %3 : vector<1x24x8xf32> to vector<24x8xf32>
    %c1 = arith.constant 1 : index
    %c0_8 = arith.constant 0 : index
    %c0_9 = arith.constant 0 : index
    %5 = vector.load %arg1[%c1, %c0_8, %c0_9] : memref<2x24x8xf32, #tpu.memory_space<vmem>>, vector<1x24x8xf32>
    %6 = vector.shape_cast %5 : vector<1x24x8xf32> to vector<24x8xf32>
    %7 = tpu.concatenate %4, %6 in 1 : vector<24x8xf32>, vector<24x8xf32> -> vector<24x16xf32>
    %c0_10 = arith.constant 0 : index
    %c0_11 = arith.constant 0 : index
    %c0_12 = arith.constant 0 : index
    %8 = vector.load %arg2[%c0_10, %c0_11, %c0_12] : memref<2x24x8xf32, #tpu.memory_space<vmem>>, vector<1x24x8xf32>
    %9 = vector.shape_cast %8 : vector<1x24x8xf32> to vector<24x8xf32>
    %c1_13 = arith.constant 1 : index
    %c0_14 = arith.constant 0 : index
    %c0_15 = arith.constant 0 : index
    %10 = vector.load %arg2[%c1_13, %c0_14, %c0_15] : memref<2x24x8xf32, #tpu.memory_space<vmem>>, vector<1x24x8xf32>
    %11 = vector.shape_cast %10 : vector<1x24x8xf32> to vector<24x8xf32>
    %12 = tpu.concatenate %9, %11 in 1 : vector<24x8xf32>, vector<24x8xf32> -> vector<24x16xf32>
    %c0_16 = arith.constant 0 : index
    %c0_17 = arith.constant 0 : index
    %c0_18 = arith.constant 0 : index
    %13 = vector.load %arg2[%c0_16, %c0_17, %c0_18] : memref<2x24x8xf32, #tpu.memory_space<vmem>>, vector<1x24x8xf32>
    %14 = vector.shape_cast %13 : vector<1x24x8xf32> to vector<24x8xf32>
    %c1_19 = arith.constant 1 : index
    %c0_20 = arith.constant 0 : index
    %c0_21 = arith.constant 0 : index
    %15 = vector.load %arg2[%c1_19, %c0_20, %c0_21] : memref<2x24x8xf32, #tpu.memory_space<vmem>>, vector<1x24x8xf32>
    %16 = vector.shape_cast %15 : vector<1x24x8xf32> to vector<24x8xf32>
    %17 = tpu.concatenate %14, %16 in 0 : vector<24x8xf32>, vector<24x8xf32> -> vector<48x8xf32>
    %18 = vector.extract_strided_slice %7 {offsets = [0, 0], sizes = [24, 8], strides = [1, 1]} : vector<24x16xf32> to vector<24x8xf32>
    %19 = vector.extract_strided_slice %7 {offsets = [0, 8], sizes = [24, 8], strides = [1, 1]} : vector<24x16xf32> to vector<24x8xf32>
    %20 = tpu.concatenate %18, %19 in 0 : vector<24x8xf32>, vector<24x8xf32> -> vector<48x8xf32>
    %c0_22 = arith.constant 0 : index
    %c0_23 = arith.constant 0 : index
    %c0_24 = arith.constant 0 : index
    %21 = vector.load %arg5[%c0_22, %c0_23, %c0_24] : memref<5x8x24xf32, #tpu.memory_space<vmem>>, vector<1x8x24xf32>
    %22 = vector.shape_cast %21 : vector<1x8x24xf32> to vector<8x24xf32>
    %cst = arith.constant dense<0.000000e+00> : vector<48x24xf32>
    %23 = tpu.matmul %20, %22, %cst {dimension_numbers = #tpu.dot_dimension_numbers<[1], [0], [0], [1], [0, 0, 1, 1], [], []>} : vector<48x8xf32>, vector<8x24xf32>, vector<48x24xf32> -> vector<48x24xf32>
    %cst_25 = arith.constant dense<0.000000e+00> : vector<24x16xf32>
    %24 = tpu.matmul %0, %7, %cst_25 {dimension_numbers = #tpu.dot_dimension_numbers<[1], [0], [0], [1], [0, 0, 1, 1], [], []>} : vector<24x24xf32>, vector<24x16xf32>, vector<24x16xf32> -> vector<24x16xf32>
    %cst_26 = arith.constant dense<0.000000e+00> : vector<24x16xf32>
    %25 = tpu.matmul %1, %7, %cst_26 {dimension_numbers = #tpu.dot_dimension_numbers<[1], [0], [0], [1], [0, 0, 1, 1], [], []>} : vector<24x24xf32>, vector<24x16xf32>, vector<24x16xf32> -> vector<24x16xf32>
    %26 = vector.extract_strided_slice %24 {offsets = [0, 0], sizes = [24, 8], strides = [1, 1]} : vector<24x16xf32> to vector<24x8xf32>
    %27 = vector.extract_strided_slice %24 {offsets = [0, 8], sizes = [24, 8], strides = [1, 1]} : vector<24x16xf32> to vector<24x8xf32>
    %28 = tpu.concatenate %26, %27 in 0 : vector<24x8xf32>, vector<24x8xf32> -> vector<48x8xf32>
    %c1_27 = arith.constant 1 : index
    %c0_28 = arith.constant 0 : index
    %c0_29 = arith.constant 0 : index
    %29 = vector.load %arg5[%c1_27, %c0_28, %c0_29] : memref<5x8x24xf32, #tpu.memory_space<vmem>>, vector<1x8x24xf32>
    %30 = vector.shape_cast %29 : vector<1x8x24xf32> to vector<8x24xf32>
    %cst_30 = arith.constant dense<0.000000e+00> : vector<48x24xf32>
    %31 = tpu.matmul %28, %30, %cst_30 {dimension_numbers = #tpu.dot_dimension_numbers<[1], [0], [0], [1], [0, 0, 1, 1], [], []>} : vector<48x8xf32>, vector<8x24xf32>, vector<48x24xf32> -> vector<48x24xf32>
    %32 = arith.addf %23, %31 : vector<48x24xf32>
    %33 = vector.extract_strided_slice %25 {offsets = [0, 0], sizes = [24, 8], strides = [1, 1]} : vector<24x16xf32> to vector<24x8xf32>
    %34 = vector.extract_strided_slice %25 {offsets = [0, 8], sizes = [24, 8], strides = [1, 1]} : vector<24x16xf32> to vector<24x8xf32>
    %35 = tpu.concatenate %33, %34 in 0 : vector<24x8xf32>, vector<24x8xf32> -> vector<48x8xf32>
    %c2 = arith.constant 2 : index
    %c0_31 = arith.constant 0 : index
    %c0_32 = arith.constant 0 : index
    %36 = vector.load %arg5[%c2, %c0_31, %c0_32] : memref<5x8x24xf32, #tpu.memory_space<vmem>>, vector<1x8x24xf32>
    %37 = vector.shape_cast %36 : vector<1x8x24xf32> to vector<8x24xf32>
    %cst_33 = arith.constant dense<0.000000e+00> : vector<48x24xf32>
    %38 = tpu.matmul %35, %37, %cst_33 {dimension_numbers = #tpu.dot_dimension_numbers<[1], [0], [0], [1], [0, 0, 1, 1], [], []>} : vector<48x8xf32>, vector<8x24xf32>, vector<48x24xf32> -> vector<48x24xf32>
    %39 = arith.addf %32, %38 : vector<48x24xf32>
    %cst_34 = arith.constant dense<0.000000e+00> : vector<24x16xf32>
    %40 = tpu.matmul %0, %24, %cst_34 {dimension_numbers = #tpu.dot_dimension_numbers<[1], [0], [0], [1], [0, 0, 1, 1], [], []>} : vector<24x24xf32>, vector<24x16xf32>, vector<24x16xf32> -> vector<24x16xf32>
    %cst_35 = arith.constant 2.000000e+00 : f32
    %41 = vector.broadcast %cst_35 : f32 to vector<24x16xf32>
    %42 = arith.mulf %41, %40 : vector<24x16xf32>
    %43 = arith.subf %42, %7 : vector<24x16xf32>
    %cst_36 = arith.constant dense<0.000000e+00> : vector<24x16xf32>
    %44 = tpu.matmul %1, %25, %cst_36 {dimension_numbers = #tpu.dot_dimension_numbers<[1], [0], [0], [1], [0, 0, 1, 1], [], []>} : vector<24x24xf32>, vector<24x16xf32>, vector<24x16xf32> -> vector<24x16xf32>
    %cst_37 = arith.constant 2.000000e+00 : f32
    %45 = vector.broadcast %cst_37 : f32 to vector<24x16xf32>
    %46 = arith.mulf %45, %44 : vector<24x16xf32>
    %47 = arith.subf %46, %7 : vector<24x16xf32>
    %48 = vector.extract_strided_slice %43 {offsets = [0, 0], sizes = [24, 8], strides = [1, 1]} : vector<24x16xf32> to vector<24x8xf32>
    %49 = vector.extract_strided_slice %43 {offsets = [0, 8], sizes = [24, 8], strides = [1, 1]} : vector<24x16xf32> to vector<24x8xf32>
    %50 = tpu.concatenate %48, %49 in 0 : vector<24x8xf32>, vector<24x8xf32> -> vector<48x8xf32>
    %c3 = arith.constant 3 : index
    %c0_38 = arith.constant 0 : index
    %c0_39 = arith.constant 0 : index
    %51 = vector.load %arg5[%c3, %c0_38, %c0_39] : memref<5x8x24xf32, #tpu.memory_space<vmem>>, vector<1x8x24xf32>
    %52 = vector.shape_cast %51 : vector<1x8x24xf32> to vector<8x24xf32>
    %cst_40 = arith.constant dense<0.000000e+00> : vector<48x24xf32>
    %53 = tpu.matmul %50, %52, %cst_40 {dimension_numbers = #tpu.dot_dimension_numbers<[1], [0], [0], [1], [0, 0, 1, 1], [], []>} : vector<48x8xf32>, vector<8x24xf32>, vector<48x24xf32> -> vector<48x24xf32>
    %54 = arith.addf %39, %53 : vector<48x24xf32>
    %55 = vector.extract_strided_slice %47 {offsets = [0, 0], sizes = [24, 8], strides = [1, 1]} : vector<24x16xf32> to vector<24x8xf32>
    %56 = vector.extract_strided_slice %47 {offsets = [0, 8], sizes = [24, 8], strides = [1, 1]} : vector<24x16xf32> to vector<24x8xf32>
    %57 = tpu.concatenate %55, %56 in 0 : vector<24x8xf32>, vector<24x8xf32> -> vector<48x8xf32>
    %c4 = arith.constant 4 : index
    %c0_41 = arith.constant 0 : index
    %c0_42 = arith.constant 0 : index
    %58 = vector.load %arg5[%c4, %c0_41, %c0_42] : memref<5x8x24xf32, #tpu.memory_space<vmem>>, vector<1x8x24xf32>
    %59 = vector.shape_cast %58 : vector<1x8x24xf32> to vector<8x24xf32>
    %cst_43 = arith.constant dense<0.000000e+00> : vector<48x24xf32>
    %60 = tpu.matmul %57, %59, %cst_43 {dimension_numbers = #tpu.dot_dimension_numbers<[1], [0], [0], [1], [0, 0, 1, 1], [], []>} : vector<48x8xf32>, vector<8x24xf32>, vector<48x24xf32> -> vector<48x24xf32>
    %61 = arith.addf %54, %60 : vector<48x24xf32>
    %62 = vector.extract_strided_slice %12 {offsets = [0, 0], sizes = [24, 8], strides = [1, 1]} : vector<24x16xf32> to vector<24x8xf32>
    %63 = vector.extract_strided_slice %12 {offsets = [0, 8], sizes = [24, 8], strides = [1, 1]} : vector<24x16xf32> to vector<24x8xf32>
    %64 = tpu.concatenate %62, %63 in 0 : vector<24x8xf32>, vector<24x8xf32> -> vector<48x8xf32>
    %c0_44 = arith.constant 0 : index
    %c0_45 = arith.constant 0 : index
    %c0_46 = arith.constant 0 : index
    %65 = vector.load %arg6[%c0_44, %c0_45, %c0_46] : memref<5x8x16xf32, #tpu.memory_space<vmem>>, vector<1x8x16xf32>
    %66 = vector.shape_cast %65 : vector<1x8x16xf32> to vector<8x16xf32>
    %cst_47 = arith.constant dense<0.000000e+00> : vector<48x16xf32>
    %67 = tpu.matmul %64, %66, %cst_47 {dimension_numbers = #tpu.dot_dimension_numbers<[1], [0], [0], [1], [0, 0, 1, 1], [], []>} : vector<48x8xf32>, vector<8x16xf32>, vector<48x16xf32> -> vector<48x16xf32>
    %cst_48 = arith.constant dense<0.000000e+00> : vector<24x16xf32>
    %68 = tpu.matmul %0, %12, %cst_48 {dimension_numbers = #tpu.dot_dimension_numbers<[1], [0], [0], [1], [0, 0, 1, 1], [], []>} : vector<24x24xf32>, vector<24x16xf32>, vector<24x16xf32> -> vector<24x16xf32>
    %cst_49 = arith.constant dense<0.000000e+00> : vector<24x16xf32>
    %69 = tpu.matmul %1, %12, %cst_49 {dimension_numbers = #tpu.dot_dimension_numbers<[1], [0], [0], [1], [0, 0, 1, 1], [], []>} : vector<24x24xf32>, vector<24x16xf32>, vector<24x16xf32> -> vector<24x16xf32>
    %70 = vector.extract_strided_slice %68 {offsets = [0, 0], sizes = [24, 8], strides = [1, 1]} : vector<24x16xf32> to vector<24x8xf32>
    %71 = vector.extract_strided_slice %68 {offsets = [0, 8], sizes = [24, 8], strides = [1, 1]} : vector<24x16xf32> to vector<24x8xf32>
    %72 = tpu.concatenate %70, %71 in 0 : vector<24x8xf32>, vector<24x8xf32> -> vector<48x8xf32>
    %c1_50 = arith.constant 1 : index
    %c0_51 = arith.constant 0 : index
    %c0_52 = arith.constant 0 : index
    %73 = vector.load %arg6[%c1_50, %c0_51, %c0_52] : memref<5x8x16xf32, #tpu.memory_space<vmem>>, vector<1x8x16xf32>
    %74 = vector.shape_cast %73 : vector<1x8x16xf32> to vector<8x16xf32>
    %cst_53 = arith.constant dense<0.000000e+00> : vector<48x16xf32>
    %75 = tpu.matmul %72, %74, %cst_53 {dimension_numbers = #tpu.dot_dimension_numbers<[1], [0], [0], [1], [0, 0, 1, 1], [], []>} : vector<48x8xf32>, vector<8x16xf32>, vector<48x16xf32> -> vector<48x16xf32>
    %76 = arith.addf %67, %75 : vector<48x16xf32>
    %77 = vector.extract_strided_slice %69 {offsets = [0, 0], sizes = [24, 8], strides = [1, 1]} : vector<24x16xf32> to vector<24x8xf32>
    %78 = vector.extract_strided_slice %69 {offsets = [0, 8], sizes = [24, 8], strides = [1, 1]} : vector<24x16xf32> to vector<24x8xf32>
    %79 = tpu.concatenate %77, %78 in 0 : vector<24x8xf32>, vector<24x8xf32> -> vector<48x8xf32>
    %c2_54 = arith.constant 2 : index
    %c0_55 = arith.constant 0 : index
    %c0_56 = arith.constant 0 : index
    %80 = vector.load %arg6[%c2_54, %c0_55, %c0_56] : memref<5x8x16xf32, #tpu.memory_space<vmem>>, vector<1x8x16xf32>
    %81 = vector.shape_cast %80 : vector<1x8x16xf32> to vector<8x16xf32>
    %cst_57 = arith.constant dense<0.000000e+00> : vector<48x16xf32>
    %82 = tpu.matmul %79, %81, %cst_57 {dimension_numbers = #tpu.dot_dimension_numbers<[1], [0], [0], [1], [0, 0, 1, 1], [], []>} : vector<48x8xf32>, vector<8x16xf32>, vector<48x16xf32> -> vector<48x16xf32>
    %83 = arith.addf %76, %82 : vector<48x16xf32>
    %cst_58 = arith.constant dense<0.000000e+00> : vector<24x16xf32>
    %84 = tpu.matmul %0, %68, %cst_58 {dimension_numbers = #tpu.dot_dimension_numbers<[1], [0], [0], [1], [0, 0, 1, 1], [], []>} : vector<24x24xf32>, vector<24x16xf32>, vector<24x16xf32> -> vector<24x16xf32>
    %cst_59 = arith.constant 2.000000e+00 : f32
    %85 = vector.broadcast %cst_59 : f32 to vector<24x16xf32>
    %86 = arith.mulf %85, %84 : vector<24x16xf32>
    %87 = arith.subf %86, %12 : vector<24x16xf32>
    %cst_60 = arith.constant dense<0.000000e+00> : vector<24x16xf32>
    %88 = tpu.matmul %1, %69, %cst_60 {dimension_numbers = #tpu.dot_dimension_numbers<[1], [0], [0], [1], [0, 0, 1, 1], [], []>} : vector<24x24xf32>, vector<24x16xf32>, vector<24x16xf32> -> vector<24x16xf32>
    %cst_61 = arith.constant 2.000000e+00 : f32
    %89 = vector.broadcast %cst_61 : f32 to vector<24x16xf32>
    %90 = arith.mulf %89, %88 : vector<24x16xf32>
    %91 = arith.subf %90, %12 : vector<24x16xf32>
    %92 = vector.extract_strided_slice %87 {offsets = [0, 0], sizes = [24, 8], strides = [1, 1]} : vector<24x16xf32> to vector<24x8xf32>
    %93 = vector.extract_strided_slice %87 {offsets = [0, 8], sizes = [24, 8], strides = [1, 1]} : vector<24x16xf32> to vector<24x8xf32>
    %94 = tpu.concatenate %92, %93 in 0 : vector<24x8xf32>, vector<24x8xf32> -> vector<48x8xf32>
    %c3_62 = arith.constant 3 : index
    %c0_63 = arith.constant 0 : index
    %c0_64 = arith.constant 0 : index
    %95 = vector.load %arg6[%c3_62, %c0_63, %c0_64] : memref<5x8x16xf32, #tpu.memory_space<vmem>>, vector<1x8x16xf32>
    %96 = vector.shape_cast %95 : vector<1x8x16xf32> to vector<8x16xf32>
    %cst_65 = arith.constant dense<0.000000e+00> : vector<48x16xf32>
    %97 = tpu.matmul %94, %96, %cst_65 {dimension_numbers = #tpu.dot_dimension_numbers<[1], [0], [0], [1], [0, 0, 1, 1], [], []>} : vector<48x8xf32>, vector<8x16xf32>, vector<48x16xf32> -> vector<48x16xf32>
    %98 = arith.addf %83, %97 : vector<48x16xf32>
    %99 = vector.extract_strided_slice %91 {offsets = [0, 0], sizes = [24, 8], strides = [1, 1]} : vector<24x16xf32> to vector<24x8xf32>
    %100 = vector.extract_strided_slice %91 {offsets = [0, 8], sizes = [24, 8], strides = [1, 1]} : vector<24x16xf32> to vector<24x8xf32>
    %101 = tpu.concatenate %99, %100 in 0 : vector<24x8xf32>, vector<24x8xf32> -> vector<48x8xf32>
    %c4_66 = arith.constant 4 : index
    %c0_67 = arith.constant 0 : index
    %c0_68 = arith.constant 0 : index
    %102 = vector.load %arg6[%c4_66, %c0_67, %c0_68] : memref<5x8x16xf32, #tpu.memory_space<vmem>>, vector<1x8x16xf32>
    %103 = vector.shape_cast %102 : vector<1x8x16xf32> to vector<8x16xf32>
    %cst_69 = arith.constant dense<0.000000e+00> : vector<48x16xf32>
    %104 = tpu.matmul %101, %103, %cst_69 {dimension_numbers = #tpu.dot_dimension_numbers<[1], [0], [0], [1], [0, 0, 1, 1], [], []>} : vector<48x8xf32>, vector<8x16xf32>, vector<48x16xf32> -> vector<48x16xf32>
    %105 = arith.addf %98, %104 : vector<48x16xf32>
    %106 = vector.extract_strided_slice %61 {offsets = [0, 0], sizes = [48, 16], strides = [1, 1]} : vector<48x24xf32> to vector<48x16xf32>
    %107 = arith.addf %106, %105 : vector<48x16xf32>
    %108 = vector.extract_strided_slice %2 {offsets = [0, 0], sizes = [1, 16], strides = [1, 1]} : vector<1x24xf32> to vector<1x16xf32>
    %109 = vector.broadcast %108 : vector<1x16xf32> to vector<48x16xf32>
    %110 = arith.addf %107, %109 : vector<48x16xf32>
    %111 = arith.negf %110 : vector<48x16xf32>
    %112 = math.exp %111 : vector<48x16xf32>
    %cst_70 = arith.constant 1.000000e+00 : f32
    %113 = vector.broadcast %cst_70 : f32 to vector<48x16xf32>
    %114 = arith.addf %113, %112 : vector<48x16xf32>
    %115 = arith.divf %113, %114 : vector<48x16xf32>
    %116 = vector.extract_strided_slice %115 {offsets = [0, 0], sizes = [48, 8], strides = [1, 1]} : vector<48x16xf32> to vector<48x8xf32>
    %117 = vector.extract_strided_slice %115 {offsets = [0, 8], sizes = [48, 8], strides = [1, 1]} : vector<48x16xf32> to vector<48x8xf32>
    %118 = arith.mulf %17, %117 : vector<48x8xf32>
    %119 = vector.extract_strided_slice %118 {offsets = [0, 0], sizes = [24, 8], strides = [1, 1]} : vector<48x8xf32> to vector<24x8xf32>
    %120 = vector.extract_strided_slice %118 {offsets = [24, 0], sizes = [24, 8], strides = [1, 1]} : vector<48x8xf32> to vector<24x8xf32>
    %121 = tpu.concatenate %119, %120 in 1 : vector<24x8xf32>, vector<24x8xf32> -> vector<24x16xf32>
    %122 = vector.extract_strided_slice %121 {offsets = [0, 0], sizes = [24, 8], strides = [1, 1]} : vector<24x16xf32> to vector<24x8xf32>
    %123 = vector.extract_strided_slice %121 {offsets = [0, 8], sizes = [24, 8], strides = [1, 1]} : vector<24x16xf32> to vector<24x8xf32>
    %124 = tpu.concatenate %122, %123 in 0 : vector<24x8xf32>, vector<24x8xf32> -> vector<48x8xf32>
    %c0_71 = arith.constant 0 : index
    %c0_72 = arith.constant 0 : index
    %c0_73 = arith.constant 0 : index
    %125 = vector.load %arg7[%c0_71, %c0_72, %c0_73] : memref<5x8x8xf32, #tpu.memory_space<vmem>>, vector<1x8x8xf32>
    %126 = vector.shape_cast %125 : vector<1x8x8xf32> to vector<8x8xf32>
    %cst_74 = arith.constant dense<0.000000e+00> : vector<48x8xf32>
    %127 = tpu.matmul %124, %126, %cst_74 {dimension_numbers = #tpu.dot_dimension_numbers<[1], [0], [0], [1], [0, 0, 1, 1], [], []>} : vector<48x8xf32>, vector<8x8xf32>, vector<48x8xf32> -> vector<48x8xf32>
    %cst_75 = arith.constant dense<0.000000e+00> : vector<24x16xf32>
    %128 = tpu.matmul %0, %121, %cst_75 {dimension_numbers = #tpu.dot_dimension_numbers<[1], [0], [0], [1], [0, 0, 1, 1], [], []>} : vector<24x24xf32>, vector<24x16xf32>, vector<24x16xf32> -> vector<24x16xf32>
    %cst_76 = arith.constant dense<0.000000e+00> : vector<24x16xf32>
    %129 = tpu.matmul %1, %121, %cst_76 {dimension_numbers = #tpu.dot_dimension_numbers<[1], [0], [0], [1], [0, 0, 1, 1], [], []>} : vector<24x24xf32>, vector<24x16xf32>, vector<24x16xf32> -> vector<24x16xf32>
    %130 = vector.extract_strided_slice %128 {offsets = [0, 0], sizes = [24, 8], strides = [1, 1]} : vector<24x16xf32> to vector<24x8xf32>
    %131 = vector.extract_strided_slice %128 {offsets = [0, 8], sizes = [24, 8], strides = [1, 1]} : vector<24x16xf32> to vector<24x8xf32>
    %132 = tpu.concatenate %130, %131 in 0 : vector<24x8xf32>, vector<24x8xf32> -> vector<48x8xf32>
    %c1_77 = arith.constant 1 : index
    %c0_78 = arith.constant 0 : index
    %c0_79 = arith.constant 0 : index
    %133 = vector.load %arg7[%c1_77, %c0_78, %c0_79] : memref<5x8x8xf32, #tpu.memory_space<vmem>>, vector<1x8x8xf32>
    %134 = vector.shape_cast %133 : vector<1x8x8xf32> to vector<8x8xf32>
    %cst_80 = arith.constant dense<0.000000e+00> : vector<48x8xf32>
    %135 = tpu.matmul %132, %134, %cst_80 {dimension_numbers = #tpu.dot_dimension_numbers<[1], [0], [0], [1], [0, 0, 1, 1], [], []>} : vector<48x8xf32>, vector<8x8xf32>, vector<48x8xf32> -> vector<48x8xf32>
    %136 = arith.addf %127, %135 : vector<48x8xf32>
    %137 = vector.extract_strided_slice %129 {offsets = [0, 0], sizes = [24, 8], strides = [1, 1]} : vector<24x16xf32> to vector<24x8xf32>
    %138 = vector.extract_strided_slice %129 {offsets = [0, 8], sizes = [24, 8], strides = [1, 1]} : vector<24x16xf32> to vector<24x8xf32>
    %139 = tpu.concatenate %137, %138 in 0 : vector<24x8xf32>, vector<24x8xf32> -> vector<48x8xf32>
    %c2_81 = arith.constant 2 : index
    %c0_82 = arith.constant 0 : index
    %c0_83 = arith.constant 0 : index
    %140 = vector.load %arg7[%c2_81, %c0_82, %c0_83] : memref<5x8x8xf32, #tpu.memory_space<vmem>>, vector<1x8x8xf32>
    %141 = vector.shape_cast %140 : vector<1x8x8xf32> to vector<8x8xf32>
    %cst_84 = arith.constant dense<0.000000e+00> : vector<48x8xf32>
    %142 = tpu.matmul %139, %141, %cst_84 {dimension_numbers = #tpu.dot_dimension_numbers<[1], [0], [0], [1], [0, 0, 1, 1], [], []>} : vector<48x8xf32>, vector<8x8xf32>, vector<48x8xf32> -> vector<48x8xf32>
    %143 = arith.addf %136, %142 : vector<48x8xf32>
    %cst_85 = arith.constant dense<0.000000e+00> : vector<24x16xf32>
    %144 = tpu.matmul %0, %128, %cst_85 {dimension_numbers = #tpu.dot_dimension_numbers<[1], [0], [0], [1], [0, 0, 1, 1], [], []>} : vector<24x24xf32>, vector<24x16xf32>, vector<24x16xf32> -> vector<24x16xf32>
    %cst_86 = arith.constant 2.000000e+00 : f32
    %145 = vector.broadcast %cst_86 : f32 to vector<24x16xf32>
    %146 = arith.mulf %145, %144 : vector<24x16xf32>
    %147 = arith.subf %146, %121 : vector<24x16xf32>
    %cst_87 = arith.constant dense<0.000000e+00> : vector<24x16xf32>
    %148 = tpu.matmul %1, %129, %cst_87 {dimension_numbers = #tpu.dot_dimension_numbers<[1], [0], [0], [1], [0, 0, 1, 1], [], []>} : vector<24x24xf32>, vector<24x16xf32>, vector<24x16xf32> -> vector<24x16xf32>
    %cst_88 = arith.constant 2.000000e+00 : f32
    %149 = vector.broadcast %cst_88 : f32 to vector<24x16xf32>
    %150 = arith.mulf %149, %148 : vector<24x16xf32>
    %151 = arith.subf %150, %121 : vector<24x16xf32>
    %152 = vector.extract_strided_slice %147 {offsets = [0, 0], sizes = [24, 8], strides = [1, 1]} : vector<24x16xf32> to vector<24x8xf32>
    %153 = vector.extract_strided_slice %147 {offsets = [0, 8], sizes = [24, 8], strides = [1, 1]} : vector<24x16xf32> to vector<24x8xf32>
    %154 = tpu.concatenate %152, %153 in 0 : vector<24x8xf32>, vector<24x8xf32> -> vector<48x8xf32>
    %c3_89 = arith.constant 3 : index
    %c0_90 = arith.constant 0 : index
    %c0_91 = arith.constant 0 : index
    %155 = vector.load %arg7[%c3_89, %c0_90, %c0_91] : memref<5x8x8xf32, #tpu.memory_space<vmem>>, vector<1x8x8xf32>
    %156 = vector.shape_cast %155 : vector<1x8x8xf32> to vector<8x8xf32>
    %cst_92 = arith.constant dense<0.000000e+00> : vector<48x8xf32>
    %157 = tpu.matmul %154, %156, %cst_92 {dimension_numbers = #tpu.dot_dimension_numbers<[1], [0], [0], [1], [0, 0, 1, 1], [], []>} : vector<48x8xf32>, vector<8x8xf32>, vector<48x8xf32> -> vector<48x8xf32>
    %158 = arith.addf %143, %157 : vector<48x8xf32>
    %159 = vector.extract_strided_slice %151 {offsets = [0, 0], sizes = [24, 8], strides = [1, 1]} : vector<24x16xf32> to vector<24x8xf32>
    %160 = vector.extract_strided_slice %151 {offsets = [0, 8], sizes = [24, 8], strides = [1, 1]} : vector<24x16xf32> to vector<24x8xf32>
    %161 = tpu.concatenate %159, %160 in 0 : vector<24x8xf32>, vector<24x8xf32> -> vector<48x8xf32>
    %c4_93 = arith.constant 4 : index
    %c0_94 = arith.constant 0 : index
    %c0_95 = arith.constant 0 : index
    %162 = vector.load %arg7[%c4_93, %c0_94, %c0_95] : memref<5x8x8xf32, #tpu.memory_space<vmem>>, vector<1x8x8xf32>
    %163 = vector.shape_cast %162 : vector<1x8x8xf32> to vector<8x8xf32>
    %cst_96 = arith.constant dense<0.000000e+00> : vector<48x8xf32>
    %164 = tpu.matmul %161, %163, %cst_96 {dimension_numbers = #tpu.dot_dimension_numbers<[1], [0], [0], [1], [0, 0, 1, 1], [], []>} : vector<48x8xf32>, vector<8x8xf32>, vector<48x8xf32> -> vector<48x8xf32>
    %165 = arith.addf %158, %164 : vector<48x8xf32>
    %166 = vector.extract_strided_slice %61 {offsets = [0, 16], sizes = [48, 8], strides = [1, 1]} : vector<48x24xf32> to vector<48x8xf32>
    %167 = arith.addf %166, %165 : vector<48x8xf32>
    %168 = vector.extract_strided_slice %2 {offsets = [0, 16], sizes = [1, 8], strides = [1, 1]} : vector<1x24xf32> to vector<1x8xf32>
    %169 = vector.broadcast %168 : vector<1x8xf32> to vector<48x8xf32>
    %170 = arith.addf %167, %169 : vector<48x8xf32>
    %171 = math.tanh %170 : vector<48x8xf32>
    %172 = arith.mulf %116, %17 : vector<48x8xf32>
    %cst_97 = arith.constant 1.000000e+00 : f32
    %173 = vector.broadcast %cst_97 : f32 to vector<48x8xf32>
    %174 = arith.subf %173, %116 : vector<48x8xf32>
    %175 = arith.mulf %174, %171 : vector<48x8xf32>
    %176 = arith.addf %172, %175 : vector<48x8xf32>
    %177 = vector.extract_strided_slice %176 {offsets = [0, 0], sizes = [24, 8], strides = [1, 1]} : vector<48x8xf32> to vector<24x8xf32>
    %c0_98 = arith.constant 0 : index
    %c0_99 = arith.constant 0 : index
    %c0_100 = arith.constant 0 : index
    %178 = vector.load %arg9[%c0_98, %c0_99, %c0_100] : memref<2x24x8xf32, #tpu.memory_space<vmem>>, vector<1x24x8xf32>
    %179 = vector.shape_cast %178 : vector<1x24x8xf32> to vector<24x8xf32>
    %180 = vector.shape_cast %177 : vector<24x8xf32> to vector<1x24x8xf32>
    tpu.vector_store %arg9[%c0_98, %c0_99, %c0_100], %180 {strides = array<i32>} : memref<2x24x8xf32, #tpu.memory_space<vmem>>, vector<1x24x8xf32>,
    %181 = vector.extract_strided_slice %176 {offsets = [24, 0], sizes = [24, 8], strides = [1, 1]} : vector<48x8xf32> to vector<24x8xf32>
    %c1_101 = arith.constant 1 : index
    %c0_102 = arith.constant 0 : index
    %c0_103 = arith.constant 0 : index
    %182 = vector.load %arg9[%c1_101, %c0_102, %c0_103] : memref<2x24x8xf32, #tpu.memory_space<vmem>>, vector<1x24x8xf32>
    %183 = vector.shape_cast %182 : vector<1x24x8xf32> to vector<24x8xf32>
    %184 = vector.shape_cast %181 : vector<24x8xf32> to vector<1x24x8xf32>
    tpu.vector_store %arg9[%c1_101, %c0_102, %c0_103], %184 {strides = array<i32>} : memref<2x24x8xf32, #tpu.memory_space<vmem>>, vector<1x24x8xf32>,
    return
  }
  func.func @transform_0(%arg0: i32) -> (i32, i32, i32) {
    %c0_i32 = arith.constant 0 : i32
    %c0_i32_0 = arith.constant 0 : i32
    %c0_i32_1 = arith.constant 0 : i32
    return %arg0, %c0_i32, %c0_i32_0 : i32, i32, i32
  }
  func.func @transform_1(%arg0: i32) -> (i32, i32, i32) {
    %c0_i32 = arith.constant 0 : i32
    %c0_i32_0 = arith.constant 0 : i32
    %c0_i32_1 = arith.constant 0 : i32
    return %arg0, %c0_i32, %c0_i32_0 : i32, i32, i32
  }
  func.func @transform_2(%arg0: i32) -> (i32, i32) {
    %c0_i32 = arith.constant 0 : i32
    %c0_i32_0 = arith.constant 0 : i32
    %c0_i32_1 = arith.constant 0 : i32
    return %c0_i32, %c0_i32_0 : i32, i32
  }
  func.func @transform_3(%arg0: i32) -> (i32, i32) {
    %c0_i32 = arith.constant 0 : i32
    %c0_i32_0 = arith.constant 0 : i32
    %c0_i32_1 = arith.constant 0 : i32
    return %c0_i32, %c0_i32_0 : i32, i32
  }
  func.func @transform_4(%arg0: i32) -> (i32, i32, i32) {
    %c0_i32 = arith.constant 0 : i32
    %c0_i32_0 = arith.constant 0 : i32
    %c0_i32_1 = arith.constant 0 : i32
    %c0_i32_2 = arith.constant 0 : i32
    return %c0_i32, %c0_i32_0, %c0_i32_1 : i32, i32, i32
  }
  func.func @transform_5(%arg0: i32) -> (i32, i32, i32) {
    %c0_i32 = arith.constant 0 : i32
    %c0_i32_0 = arith.constant 0 : i32
    %c0_i32_1 = arith.constant 0 : i32
    %c0_i32_2 = arith.constant 0 : i32
    return %c0_i32, %c0_i32_0, %c0_i32_1 : i32, i32, i32
  }
  func.func @transform_6(%arg0: i32) -> (i32, i32, i32) {
    %c0_i32 = arith.constant 0 : i32
    %c0_i32_0 = arith.constant 0 : i32
    %c0_i32_1 = arith.constant 0 : i32
    %c0_i32_2 = arith.constant 0 : i32
    return %c0_i32, %c0_i32_0, %c0_i32_1 : i32, i32, i32
  }
  func.func @transform_7(%arg0: i32) -> (i32, i32) {
    %c0_i32 = arith.constant 0 : i32
    %c0_i32_0 = arith.constant 0 : i32
    %c0_i32_1 = arith.constant 0 : i32
    return %c0_i32, %c0_i32_0 : i32, i32
  }
  func.func @transform_8(%arg0: i32) -> (i32, i32, i32) {
    %c0_i32 = arith.constant 0 : i32
    %c0_i32_0 = arith.constant 0 : i32
    %c0_i32_1 = arith.constant 0 : i32
    return %arg0, %c0_i32, %c0_i32_0 : i32, i32, i32
  }
}

</mosaic_0001>

<bundles_post_ra>
// kernel: dcrnn_layer_pallas.1
= control target key start
LH: loop header
LB: loop body
LE: loop exit
PB: predicated region body
PF: predicated region fallthrough
CT: control target
= control target key end

     0   :  { %s2309_s27 = smov 0   ;;  %s2959_s0 = inlined_call_operand.vmem [shape: f32[4,24,8], index: 0, kind: input, shape index: {}]   ;;  %s2960_s1 = inlined_call_operand.vmem [shape: f32[4,24,8], index: 1, kind: input, shape index: {}, may-alias: {1,8}]   ;;  %s2961_s2 = inlined_call_operand.vmem [shape: f32[24,24], index: 2, kind: input, shape index: {}]   ;;  %s2962_s3 = inlined_call_operand.vmem [shape: f32[24,24], index: 3, kind: input, shape index: {}]   ;;  %s2963_s4 = inlined_call_operand.vmem [shape: f32[5,8,24], index: 4, kind: input, shape index: {}]   ;;  %s2964_s5 = inlined_call_operand.vmem [shape: f32[5,8,16], index: 5, kind: input, shape index: {}]   ;;  %s2965_s6 = inlined_call_operand.vmem [shape: f32[5,8,8], index: 6, kind: input, shape index: {}]   ;;  %s2966_s7 = inlined_call_operand.vmem [shape: f32[1,24], index: 7, kind: input, shape index: {}]   ;;  %s2967_s8 = inlined_call_operand.vmem [shape: f32[4,24,8], index: 8, kind: output, shape index: {}, may-alias: {1,8}]  }
   0x1 LB: > { %s2020_s28 = sadd.s32 4294967295, %s2258_s27   ;;  %p2024_p0 = scmp.ge.s32.totalorder %s2258_s27, 1  ;;  %s2258_s27 = sphi %s2309_s27, %s18_s27  }
   0x2   : > { %p276_p1 = scmp.lt.s32.totalorder %s2258_s27, 3 }
   0x4   : > { %p277_p2 = pnand %p2024_p0, %p276_p1 }
   0x5   : > { %s2025_s29 = sshll.u32 (!%p277_p2), %s2020_s28, 1  ;;  %s2260_s12 = smov (!%p277_p2), 8  }
   0x6   : > { %280 = sbr.rel (%p277_p2) target bundleno = 2168 (0x878), region = 52  ;;  %p319_p3 = scmp.lt.s32.totalorder (!%p277_p2), %s2025_s29, 3 }
   0x7   : > { %s2261_s15 = smov (!%p277_p2), 120   ;;  %s2263_s19 = smov (!%p277_p2), 112  }
   0xb   : > { %s2969_s29 = smov (!%p319_p3, %s2025_s29), 3  ;;  %v400_v3 = vld [vmem:[%s2963_s4] sm:$0xff]  ;;  %vm365_vm0 = vcmask 64512   ;;  %vm401_vm1 = vcmask 195584   ;;  %v2373_v16 = vld [vmem:[%s2961_s2 + $0x8] sm:$0xff]  ;;  %v2389_v18 = vld [vmem:[%s2961_s2 + $0x10] sm:$0xff] }
   0xc   : > { %s2317_s30 = smul.u32 24, %s2969_s29  ;;  %557 = vmatpush.msra.mxu3 %v400_v3  ;;  %v2355_v14 = vld [vmem:[%s2961_s2] sm:$0xff]  ;;  %v2378_v17 = vld [vmem:[%s2962_s3 + $0x8] sm:$0xff]  ;;  %v2394_v19 = vld [vmem:[%s2962_s3 + $0x10] sm:$0xff] }
   0xd   : > { %v2360_v15 = vld [vmem:[%s2962_s3] sm:$0xff]  ;;  %v2043_v20 = vld [vmem:[%s2963_s4 + $0x8] sm:$0xff]  ;;  %v2056_v21 = vld [vmem:[%s2963_s4 + $0x10] sm:$0xff] }
   0xe   : > { %s323_s11 = scalar_lea.vmem %s2959_s0, %s2317_s30  ;;  %s2333_s17 = scalar_lea.vmem %s2960_s1, %s2317_s30  ;;  %510 = vmatpush.msra.mxu2 %v2043_v20  ;;  %v2069_v45 = vld [vmem:[%s2963_s4 + $0x18] sm:$0xff]  ;;  %v2076_v56 = vld [vmem:[%s2963_s4 + $0x20] sm:$0xff] }
   0xf   : > { %v2033_v0 = vld [vmem:[%s323_s11 + $0x28] sm:$0xff]  ;;  %v2031_v1 = vld [vmem:[%s323_s11 + $0x18] sm:$0xff]  ;;  %v2032_v2 = vld [vmem:[%s323_s11 + $0x20] sm:$0xff]  ;;  %s2921_s22 = scalar_lea.vmem %s2967_s8, %s2317_s30 }
  0x10   : > { %360 = vrot.lane.b32.xlu0 %v2033_v0, %s2260_s12  ;;  %356 = vrot.lane.b32.xlu1 %v2031_v1, %s2260_s12  ;;  %v2036_v4 = vld [vmem:[%s2333_s17 + $0x28] sm:$0xff]  ;;  %v348_v5 = vld [vmem:[%s323_s11 + $0x10] sm:$0xff] }
  0x11   : > { %v346_v6 = vld [vmem:[%s323_s11] sm:$0xff]  ;;  %v347_v11 = vld [vmem:[%s323_s11 + $0x8] sm:$0xff]  ;;  %v2427_v29 = vld [vmem:[%s2333_s17 + $0x18] sm:$0xff] }
  0x12   : > { %v2411_v24 = vld [vmem:[%s2333_s17 + $0x20] sm:$0xff]  ;;  %v2437_v30 = vld [vmem:[%s2333_s17 + $0x10] sm:$0xff]  ;;  %v2451_v38 = vld [vmem:[%s2333_s17 + $0x8] sm:$0xff] }
  0x13   : > { %v2448_v37 = vld [vmem:[%s2333_s17] sm:$0xff] }
  0x18   : > { %358 = vrot.lane.b32.xlu0 %v2032_v2, %s2260_s12 }
  0x20   : > { %383 = vrot.lane.b32.xlu0 %v2036_v4, %s2260_s12 }
  0x82   : > { %v361_v7 = vpop.permute.xlu0 %360  ;;  %v357_v8 = vpop.permute.xlu1 %356 }
  0x83   : > { %v2338_v9 = vsel %vm365_vm0, %v348_v5, %v361_v7  ;;  %v2341_v10 = vsel %vm365_vm0, %v346_v6, %v357_v8 }
  0x84   : > { %424 = vmatpush.msra.mxu0 %v2338_v9  ;;  %459 = vmatpush.msra.mxu1 %v2338_v9 }
  0x85   : > { %2050 = vmatmul.msk.f32.vlgmr.msra.gmra.mxu3 %vm365_vm0, %v2341_v10 }
  0x8a   : > { %v359_v12 = vpop.permute.xlu0 %358 }
  0x8b   : > { %v2348_v13 = vsel %vm365_vm0, %v347_v11, %v359_v12 }
  0x8c   : > { %425 = vmatpush.msra.mxu0 %v2348_v13  ;;  %460 = vmatpush.msra.mxu1 %v2348_v13 }
  0x8d   : > { %2051 = vmatmul.msk.f32.gmra.mxu3 %vm365_vm0, %v2348_v13 }
  0x8e   : > { %426 = vmatpush.msra.mxu0 %v2341_v10  ;;  %461 = vmatpush.msra.mxu1 %v2341_v10 }
  0x8f   : > { %2037 = vmatmul.msk.f32.vlgmr.msra.gmra.mxu0 %vm401_vm1, %v2355_v14  ;;  %2040 = vmatmul.msk.f32.vlgmr.msra.gmra.mxu1 %vm401_vm1, %v2360_v15 }
  0x90   : > { %615 = vmatpush.msrb.mxu0 %v2056_v21 }
  0x92   : > { %v384_v31 = vpop.permute.xlu0 %383 }
  0x93   : > { %v2441_v32 = vsel %vm365_vm0, %v2437_v30, %v384_v31 }
  0x94   : > { %882 = vmatpush.msra.mxu0 %v2441_v32 }
  0x95   : > { %2052 = vmatmul.msk.f32.gmra.mxu3 %vm365_vm0, %v2338_v9 }
  0x97   : > { %2038 = vmatmul.msk.f32.gmra.mxu0 %vm401_vm1, %v2373_v16  ;;  %2041 = vmatmul.msk.f32.gmra.mxu1 %vm401_vm1, %v2378_v17 }
  0x9f   : > { %2039 = vmatmul.msk.f32.gmra.mxu0 %vm401_vm1, %v2389_v18  ;;  %2042 = vmatmul.msk.f32.gmra.mxu1 %vm401_vm1, %v2394_v19 }
 0x108   : > { %v2506_v54 = vpop.f32.mrf.mxu3 }
 0x10c   : > { %v428_v22 = vpop.f32.mrf.mxu0  ;;  %v463_v23 = vpop.f32.mrf.mxu1 }
 0x10d   : > { %580 = vrot.lane.b32.xlu0 %v463_v23, %s2261_s15  ;;  %475 = vrot.lane.b32.xlu1 %v428_v22, %s2261_s15 }
 0x10e   : > { %2044 = vmatmul.msk.f32.vlgmr.msra.gmra.mxu2 %vm365_vm0, %v428_v22  ;;  %2057 = vmatmul.msk.f32.vlgmr.msrb.gmra.mxu0 %vm365_vm0, %v463_v23 }
 0x110   : > { %v2513_v57 = vpop.f32.mrf.mxu3 }
 0x114   : > { %v431_v25 = vpop.f32.mrf.mxu0  ;;  %v466_v26 = vpop.f32.mrf.mxu1 }
 0x115   : > { %394 = vrot.lane.b32.xlu0 %v2341_v10, %s2261_s15  ;;  %381 = vrot.lane.b32.xlu1 %v2411_v24, %s2260_s12 }
 0x116   : > { %477 = vrot.lane.b32.xlu2 %v431_v25, %s2261_s15  ;;  %2045 = vmatmul.msk.f32.gmra.mxu2 %vm365_vm0, %v431_v25 }
 0x117   : > { %2058 = vmatmul.msk.f32.gmra.mxu0 %vm365_vm0, %v466_v26 }
 0x118   : > { %v2517_v59 = vpop.f32.mrf.mxu3 }
 0x11c   : > { %v434_v27 = vpop.f32.mrf.mxu0  ;;  %v469_v28 = vpop.f32.mrf.mxu1 }
 0x11d   : > { %582 = vrot.lane.b32.xlu1 %v466_v26, %s2261_s15  ;;  %654 = vmatpush.msrb.mxu1 %v434_v27 }
 0x11e   : > { %479 = vrot.lane.b32.xlu2 %v434_v27, %s2261_s15  ;;  %2046 = vmatmul.msk.f32.gmra.mxu2 %vm365_vm0, %v434_v27 }
 0x11f   : > { %2186 = vmatpush.msrb.mxu3 %v434_v27  ;;  %655 = vmatpush.msrb.mxu1 %v431_v25 }
 0x120   : > { %2059 = vmatmul.msk.f32.gmra.mxu0 %vm365_vm0, %v469_v28  ;;  %686 = vmatpush.msrb.mxu2 %v469_v28 }
 0x121   : > { %2187 = vmatpush.msrb.mxu3 %v431_v25  ;;  %656 = vmatpush.msrb.mxu1 %v428_v22 }
 0x122   : > { %2063 = vmatmul.msk.f32.vlgmr.msrb.gmra.mxu1 %vm401_vm1, %v2355_v14  ;;  %687 = vmatpush.msrb.mxu2 %v466_v26 }
 0x123   : > { %2188 = vmatpush.msrb.mxu3 %v428_v22  ;;  %807 = vmatpush.msra.mxu1 %v2076_v56 }
 0x124   : > { %688 = vmatpush.msrb.mxu2 %v463_v23 }
 0x125   : > { %396 = vrot.lane.b32.xlu1 %v2348_v13, %s2261_s15  ;;  %743 = vmatpush.msra.mxu3 %v2069_v45  ;;  %v842_v45 = vld [vmem:[%s2964_s5] sm:$0xff] }
 0x126   : > { %379 = vrot.lane.b32.xlu2 %v2427_v29, %s2260_s12  ;;  %856 = vmatpush.msra.mxu2 %v2441_v32 }
 0x12e   : > { %584 = vrot.lane.b32.xlu2 %v469_v28, %s2261_s15 }
 0x136   : > { %398 = vrot.lane.b32.xlu2 %v2338_v9, %s2261_s15 }
 0x170   : > { %v478_v33 = vpop.permute.xlu2 %477 }
 0x178   : > { %v480_v34 = vpop.permute.xlu2 %479 }
 0x17f   : > { %v581_v35 = vpop.permute.xlu0 %580  ;;  %v476_v36 = vpop.permute.xlu1 %475 }
 0x180   : > { %2047 = vmatmul.msk.f32.gmra.mxu2 %vm365_vm0, %v476_v36  ;;  %2060 = vmatmul.msk.f32.gmra.mxu0 %vm365_vm0, %v581_v35  ;;  %v380_v39 = vpop.permute.xlu2 %379 }
 0x181   : > { %v2455_v42 = vsel %vm365_vm0, %v2448_v37, %v380_v39 }
 0x187   : > { %v395_v40 = vpop.permute.xlu0 %394  ;;  %v382_v41 = vpop.permute.xlu1 %381 }
 0x188   : > { %v2459_v43 = vsel %vm365_vm0, %v2451_v38, %v382_v41  ;;  %2048 = vmatmul.msk.f32.gmra.mxu2 %vm365_vm0, %v478_v33  ;;  %2053 = vmatmul.msk.f32.gmra.mxu3 %vm365_vm0, %v395_v40  ;;  %v585_v46 = vpop.permute.xlu2 %584  ;;  %v2089_v40 = vld [vmem:[%s2964_s5 + $0x8] sm:$0xff] }
 0x189   : > { %857 = vmatpush.msra.mxu2 %v2459_v43  ;;  %883 = vmatpush.msra.mxu0 %v2459_v43 }
 0x18b   : > { %858 = vmatpush.msra.mxu2 %v2455_v42  ;;  %884 = vmatpush.msra.mxu0 %v2455_v42  ;;  %v2525_v63 = vpop.f32.mrf.mxu0 }
 0x18f   : > { %v583_v44 = vpop.permute.xlu1 %582 }
 0x190   : > { %2049 = vmatmul.msk.f32.gmra.mxu2 %vm365_vm0, %v480_v34  ;;  %2061 = vmatmul.msk.f32.gmra.mxu0 %vm365_vm0, %v583_v44  ;;  %v399_v48 = vpop.permute.xlu2 %398  ;;  %v2102_v44 = vld [vmem:[%s2964_s5 + $0x10] sm:$0xff] }
 0x191   : > { %v2502_v52 = vpop.f32.mrf.mxu2  ;;  %1038 = vmatpush.msrb.mxu0 %v2102_v44 }
 0x194   : > { %v2532_v4 = vpop.f32.mrf.mxu0 }
 0x197   : > { %v397_v47 = vpop.permute.xlu1 %396 }
 0x198   : > { %2054 = vmatmul.msk.f32.gmra.mxu3 %vm365_vm0, %v397_v47  ;;  %2066 = vmatmul.msk.f32.vlgmr.msrb.gmra.mxu2 %vm401_vm1, %v2360_v15 }
 0x199   : > { %2062 = vmatmul.msk.f32.gmra.mxu0 %vm365_vm0, %v585_v46  ;;  %2189 = vmatpush.msrb.mxu2 %v2441_v32  ;;  %v2504_v53 = vpop.f32.mrf.mxu2 }
 0x19b   : > { %2190 = vmatpush.msrb.mxu2 %v2459_v43 }
 0x19d   : > { %2191 = vmatpush.msrb.mxu2 %v2455_v42  ;;  %v2540_v12 = vpop.f32.mrf.mxu0 }
 0x19f   : > { %v658_v49 = vpop.f32.mrf.mxu1 }
 0x1a0   : > { %2055 = vmatmul.msk.f32.gmra.mxu3 %vm365_vm0, %v399_v48  ;;  %2067 = vmatmul.msk.f32.gmra.mxu2 %vm401_vm1, %v2378_v17  ;;  %v667_v50 = vmul.f32 2.0, %v658_v49 }
 0x1a1   : > { %2086 = vmatmul.msk.f32.vlgmr.msra.gmra.mxu0 %vm401_vm1, %v2360_v15  ;;  %v2508_v55 = vpop.f32.mrf.mxu2 }
 0x1a2   : > { %v670_v51 = vsub.f32 %v667_v50, %v2341_v10 }
 0x1a8   : > { %2064 = vmatmul.msk.f32.vlgmr.msrb.gmra.mxu3 %vm401_vm1, %v2373_v16  ;;  %2068 = vmatmul.msk.f32.gmra.mxu2 %vm401_vm1, %v2394_v19 }
 0x1a9   : > { %980 = vmatpush.msrb.mxu3 %v842_v45 }
 0x1b0   : > { %2065 = vmatmul.msk.f32.gmra.mxu3 %vm401_vm1, %v2389_v18  ;;  %2083 = vmatmul.msk.f32.vlgmr.msra.gmra.mxu2 %vm401_vm1, %v2355_v14 }
 0x1b1   : > { %933 = vmatpush.msra.mxu2 %v2089_v40 }
 0x1b8   : > { %2070 = vmatmul.msk.f32.vlgmr.msra.gmra.mxu3 %vm365_vm0, %v670_v51  ;;  %2084 = vmatmul.msk.f32.gmra.mxu2 %vm401_vm1, %v2373_v16 }
 0x1c0   : > { %2085 = vmatmul.msk.f32.gmra.mxu2 %vm401_vm1, %v2389_v18 }
 0x1c8   : > { %2087 = vmatmul.msk.f32.vlgmr.msrb.gmra.mxu2 %vm401_vm1, %v2378_v17 }
 0x1d0   : > { %2088 = vmatmul.msk.f32.gmra.mxu2 %vm401_vm1, %v2394_v19 }
 0x1fd   : > { %v2548_v27 = vpop.f32.mrf.mxu0 }
 0x203   : > { %v2515_v58 = vpop.f32.mrf.mxu2 }
 0x20b   : > { %v2519_v60 = vpop.f32.mrf.mxu2  ;;  %v2521_v61 = vpop.f32.mrf.mxu3 }
 0x20d   : > { %v2556_v33 = vpop.f32.mrf.mxu0 }
 0x213   : > { %v2523_v62 = vpop.f32.mrf.mxu2 }
 0x21b   : > { %v2527_v0 = vpop.f32.mrf.mxu3  ;;  %v690_v1 = vpop.f32.mrf.mxu2 }
 0x21c   : > { %v699_v2 = vmul.f32 2.0, %v690_v1 }
 0x21e   : > { %v702_v3 = vsub.f32 %v699_v2, %v2341_v10 }
 0x220   : > { %772 = vrot.lane.b32.xlu0 %v702_v3, %s2261_s15  ;;  %2077 = vmatmul.msk.f32.vlgmr.msra.gmra.mxu1 %vm365_vm0, %v702_v3 }
 0x223   : > { %v2534_v5 = vpop.f32.mrf.mxu3  ;;  %v693_v6 = vpop.f32.mrf.mxu2 }
 0x224   : > { %v700_v7 = vmul.f32 2.0, %v693_v6 }
 0x226   : > { %v703_v8 = vsub.f32 %v700_v7, %v2348_v13 }
 0x228   : > { %708 = vrot.lane.b32.xlu0 %v670_v51, %s2261_s15  ;;  %774 = vrot.lane.b32.xlu1 %v703_v8, %s2261_s15 }
 0x229   : > { %2078 = vmatmul.msk.f32.gmra.mxu1 %vm365_vm0, %v703_v8 }
 0x22b   : > { %v661_v11 = vpop.f32.mrf.mxu3  ;;  %v696_v10 = vpop.f32.mrf.mxu2 }
 0x22c   : > { %v668_v20 = vmul.f32 2.0, %v661_v11  ;;  %v701_v21 = vmul.f32 2.0, %v696_v10 }
 0x22e   : > { %v671_v22 = vsub.f32 %v668_v20, %v2348_v13  ;;  %v704_v23 = vsub.f32 %v701_v21, %v2338_v9 }
 0x230   : > { %2071 = vmatmul.msk.f32.gmra.mxu3 %vm365_vm0, %v671_v22  ;;  %710 = vrot.lane.b32.xlu1 %v671_v22, %s2261_s15  ;;  %v569_v22 = vadd.f32 %v2521_v61, %v2515_v58  ;;  %v575_v61 = vadd.f32 %v2534_v5, %v2523_v62 }
 0x231   : > { %776 = vrot.lane.b32.xlu2 %v704_v23, %s2261_s15  ;;  %2079 = vmatmul.msk.f32.gmra.mxu1 %vm365_vm0, %v704_v23 }
 0x232   : > { %v638_v23 = vadd.f32 %v2548_v27, %v569_v22 }
 0x233   : > { %v664_v25 = vpop.f32.mrf.mxu3  ;;  %v860_v26 = vpop.f32.mrf.mxu2 }
 0x234   : > { %v669_v28 = vmul.f32 2.0, %v664_v25  ;;  %898 = vrot.lane.b32.xlu0 %v860_v26, %s2261_s15  ;;  %2090 = vmatmul.msk.f32.vlgmr.msra.gmra.mxu2 %vm365_vm0, %v860_v26 }
 0x236   : > { %v672_v31 = vsub.f32 %v669_v28, %v2338_v9  ;;  %v2562_v9 = vpop.f32.mrf.mxu0 }
 0x238   : > { %2072 = vmatmul.msk.f32.gmra.mxu3 %vm365_vm0, %v672_v31  ;;  %836 = vrot.lane.b32.xlu1 %v2455_v42, %s2261_s15 }
 0x239   : > { %712 = vrot.lane.b32.xlu2 %v672_v31, %s2261_s15  ;;  %v572_v31 = vadd.f32 %v2527_v0, %v2519_v60  ;;  %v640_v0 = vadd.f32 %v2562_v9, %v575_v61 }
 0x23b   : > { %v863_v13 = vpop.f32.mrf.mxu2  ;;  %v2621_v11 = vpop.f32.mrf.mxu3 }
 0x23c   : > { %838 = vrot.lane.b32.xlu0 %v2459_v43, %s2261_s15  ;;  %2091 = vmatmul.msk.f32.gmra.mxu2 %vm365_vm0, %v863_v13 }
 0x23e   : > { %v886_v36 = vpop.f32.mrf.mxu0 }
 0x23f   : > { %2103 = vmatmul.msk.f32.vlgmr.msrb.gmra.mxu0 %vm365_vm0, %v886_v36 }
 0x241   : > { %900 = vrot.lane.b32.xlu2 %v863_v13, %s2261_s15 }
 0x243   : > { %v866_v34 = vpop.f32.mrf.mxu2 }
 0x244   : > { %902 = vrot.lane.b32.xlu1 %v866_v34, %s2261_s15  ;;  %1077 = vmatpush.msrb.mxu1 %v866_v34 }
 0x245   : > { %2092 = vmatmul.msk.f32.gmra.mxu2 %vm365_vm0, %v866_v34  ;;  %v2122_v34 = vld [vmem:[%s2964_s5 + $0x20] sm:$0xff] }
 0x246   : > { %1078 = vmatpush.msrb.mxu1 %v863_v13  ;;  %1230 = vmatpush.msra.mxu3 %v2122_v34 }
 0x248   : > { %1079 = vmatpush.msrb.mxu1 %v860_v26 }
 0x249   : > { %840 = vrot.lane.b32.xlu2 %v2441_v32, %s2261_s15 }
 0x24b   : > { %v889_v35 = vpop.f32.mrf.mxu2 }
 0x24c   : > { %2104 = vmatmul.msk.f32.gmra.mxu0 %vm365_vm0, %v889_v35 }
 0x251   : > { %1003 = vrot.lane.b32.xlu2 %v886_v36, %s2261_s15 }
 0x253   : > { %v892_v39 = vpop.f32.mrf.mxu2 }
 0x254   : > { %1109 = vmatpush.msra.mxu1 %v892_v39  ;;  %2105 = vmatmul.msk.f32.gmra.mxu0 %vm365_vm0, %v892_v39 }
 0x256   : > { %1110 = vmatpush.msra.mxu1 %v889_v35 }
 0x258   : > { %1111 = vmatpush.msra.mxu1 %v886_v36 }
 0x259   : > { %1005 = vrot.lane.b32.xlu2 %v889_v35, %s2261_s15  ;;  %v639_v35 = vadd.f32 %v2556_v33, %v572_v31 }
 0x261   : > { %1007 = vrot.lane.b32.xlu2 %v892_v39, %s2261_s15 }
 0x28b   : > { %v777_v41 = vpop.permute.xlu2 %776 }
 0x292   : > { %v773_v46 = vpop.permute.xlu0 %772 }
 0x293   : > { %v713_v47 = vpop.permute.xlu2 %712  ;;  %2080 = vmatmul.msk.f32.gmra.mxu1 %vm365_vm0, %v773_v46 }
 0x29a   : > { %v709_v48 = vpop.permute.xlu0 %708  ;;  %v775_v49 = vpop.permute.xlu1 %774 }
 0x29b   : > { %v901_v50 = vpop.permute.xlu2 %900  ;;  %2073 = vmatmul.msk.f32.gmra.mxu3 %vm365_vm0, %v709_v48  ;;  %2081 = vmatmul.msk.f32.gmra.mxu1 %vm365_vm0, %v775_v49 }
 0x2a2   : > { %v711_v51 = vpop.permute.xlu1 %710 }
 0x2a3   : > { %v841_v56 = vpop.permute.xlu2 %840  ;;  %2074 = vmatmul.msk.f32.gmra.mxu3 %vm365_vm0, %v711_v51  ;;  %2082 = vmatmul.msk.f32.gmra.mxu1 %vm365_vm0, %v777_v41 }
 0x2a6   : > { %v899_v1 = vpop.permute.xlu0 %898 }
 0x2a7   : > { %2093 = vmatmul.msk.f32.gmra.mxu2 %vm365_vm0, %v899_v1 }
 0x2aa   : > { %v837_v3 = vpop.permute.xlu1 %836 }
 0x2ab   : > { %2075 = vmatmul.msk.f32.gmra.mxu3 %vm365_vm0, %v713_v47  ;;  %2109 = vmatmul.msk.f32.vlgmr.msrb.gmra.mxu1 %vm401_vm1, %v2355_v14  ;;  %v1004_v2 = vpop.permute.xlu2 %1003 }
 0x2ac   : > { %2106 = vmatmul.msk.f32.gmra.mxu0 %vm365_vm0, %v1004_v2 }
 0x2af   : > { %2094 = vmatmul.msk.f32.gmra.mxu2 %vm365_vm0, %v901_v50 }
 0x2b3   : > { %2096 = vmatmul.msk.f32.vlgmr.msrb.gmra.mxu3 %vm365_vm0, %v2455_v42  ;;  %2110 = vmatmul.msk.f32.gmra.mxu1 %vm401_vm1, %v2373_v16  ;;  %v1006_v6 = vpop.permute.xlu2 %1005  ;;  %v839_v16 = vpop.permute.xlu0 %838 }
 0x2b4   : > { %2107 = vmatmul.msk.f32.gmra.mxu0 %vm365_vm0, %v1006_v6  ;;  %v2628_v10 = vpop.f32.mrf.mxu3 }
 0x2b6   : > { %v903_v7 = vpop.permute.xlu1 %902 }
 0x2b7   : > { %2095 = vmatmul.msk.f32.gmra.mxu2 %vm365_vm0, %v903_v7  ;;  %v935_v47 = vpop.f32.mrf.mxu2 }
 0x2bb   : > { %2097 = vmatmul.msk.f32.gmra.mxu3 %vm365_vm0, %v2459_v43  ;;  %2111 = vmatmul.msk.f32.gmra.mxu1 %vm401_vm1, %v2389_v18  ;;  %v1008_v14 = vpop.permute.xlu2 %1007  ;;  %v2617_v18 = vpop.f32.mrf.mxu1 }
 0x2bc   : > { %2108 = vmatmul.msk.f32.gmra.mxu0 %vm365_vm0, %v1008_v14  ;;  %v2630_v21 = vpop.f32.mrf.mxu3  ;;  %v1040_v61 = vpop.f32.mrf.mxu0 }
 0x2bf   : > { %v938_v51 = vpop.f32.mrf.mxu2 }
 0x2c3   : > { %2098 = vmatmul.msk.f32.gmra.mxu3 %vm365_vm0, %v2441_v32  ;;  %2112 = vmatmul.msk.f32.vlgmr.msra.gmra.mxu1 %vm401_vm1, %v2360_v15  ;;  %v2619_v8 = vpop.f32.mrf.mxu1 }
 0x2c8   : > { %v941_v7 = vpop.f32.mrf.mxu2 }
 0x2cb   : > { %2099 = vmatmul.msk.f32.gmra.mxu3 %vm365_vm0, %v837_v3  ;;  %2113 = vmatmul.msk.f32.gmra.mxu1 %vm401_vm1, %v2378_v17  ;;  %v2623_v15 = vpop.f32.mrf.mxu1  ;;  %v2115_v17 = vld [vmem:[%s2964_s5 + $0x18] sm:$0xff] }
 0x2cc   : > { %1166 = vmatpush.msrb.mxu2 %v2115_v17 }
 0x2d3   : > { %2100 = vmatmul.msk.f32.gmra.mxu3 %vm365_vm0, %v839_v16  ;;  %2114 = vmatmul.msk.f32.gmra.mxu1 %vm401_vm1, %v2394_v19 }
 0x2db   : > { %2101 = vmatmul.msk.f32.gmra.mxu3 %vm365_vm0, %v841_v56 }
 0x310   : > { %v818_v20 = vpop.f32.mrf.mxu1 }
 0x318   : > { %v821_v19 = vpop.f32.mrf.mxu1 }
 0x31e   : > { %v754_v25 = vpop.f32.mrf.mxu3 }
 0x31f   : > { %v766_v26 = vadd.f32 %v754_v25, %v638_v23 }
 0x320   : > { %v824_v28 = vpop.f32.mrf.mxu1 }
 0x321   : > { %v2637_v13 = vadd.f32 %v818_v20, %v766_v26 }
 0x326   : > { %v757_v36 = vpop.f32.mrf.mxu3 }
 0x327   : > { %v767_v39 = vadd.f32 %v757_v36, %v639_v35 }
 0x328   : > { %v1081_v58 = vpop.f32.mrf.mxu1 }
 0x329   : > { %v2645_v27 = vadd.f32 %v821_v19, %v767_v39  ;;  %v1090_v40 = vmul.f32 2.0, %v1081_v58 }
 0x32a   : > { %v944_v34 = vpop.f32.mrf.mxu2 }
 0x32b   : > { %v1093_v60 = vsub.f32 %v1090_v40, %v2455_v42 }
 0x32d   : > { %1131 = vrot.lane.b32.xlu0 %v1093_v60, %s2261_s15  ;;  %2116 = vmatmul.msk.f32.vlgmr.msrb.gmra.mxu2 %vm365_vm0, %v1093_v60 }
 0x32e   : > { %v760_v41 = vpop.f32.mrf.mxu3 }
 0x32f   : > { %v768_v44 = vadd.f32 %v760_v41, %v640_v0  ;;  %v1043_v0 = vpop.f32.mrf.mxu0 }
 0x330   : > { %v1084_v33 = vpop.f32.mrf.mxu1 }
 0x331   : > { %v2651_v45 = vadd.f32 %v824_v28, %v768_v44  ;;  %v1091_v46 = vmul.f32 2.0, %v1084_v33 }
 0x332   : > { %v947_v36 = vpop.f32.mrf.mxu2 }
 0x333   : > { %v1094_v62 = vsub.f32 %v1091_v46, %v2459_v43 }
 0x335   : > { %1133 = vrot.lane.b32.xlu0 %v1094_v62, %s2261_s15  ;;  %2117 = vmatmul.msk.f32.gmra.mxu2 %vm365_vm0, %v1094_v62 }
 0x336   : > { %v982_v5 = vpop.f32.mrf.mxu3 }
 0x337   : > { %v2656_v48 = vadd.f32 %v982_v5, %v935_v47  ;;  %v1046_v33 = vpop.f32.mrf.mxu0  ;;  %v563_v47 = vadd.f32 %v2513_v57, %v2504_v53 }
 0x338   : > { %v1087_v9 = vpop.f32.mrf.mxu1 }
 0x339   : > { %v1092_v49 = vmul.f32 2.0, %v1087_v9  ;;  %v636_v5 = vadd.f32 %v2532_v4, %v563_v47 }
 0x33a   : > { %v950_v58 = vpop.f32.mrf.mxu2 }
 0x33b   : > { %v1095_v50 = vsub.f32 %v1092_v49, %v2441_v32  ;;  %v764_v49 = vadd.f32 %v2628_v10, %v636_v5 }
 0x33d   : > { %1135 = vrot.lane.b32.xlu0 %v1095_v50, %s2261_s15  ;;  %2118 = vmatmul.msk.f32.gmra.mxu2 %vm365_vm0, %v1095_v50 }
 0x33e   : > { %v985_v56 = vpop.f32.mrf.mxu3 }
 0x33f   : > { %v986_v1 = vadd.f32 %v985_v56, %v938_v51  ;;  %v1049_v50 = vpop.f32.mrf.mxu0  ;;  %v566_v56 = vadd.f32 %v2517_v59, %v2508_v55  ;;  %v2691_v55 = vld [vmem:[%s2966_s7] ss:$0 sm:$0xff] }
 0x340   : > { %v1113_v2 = vpop.f32.mrf.mxu1 }
 0x341   : > { %v1122_v3 = vmul.f32 2.0, %v1113_v2  ;;  %v1059_v9 = vadd.f32 %v1043_v0, %v986_v1  ;;  %v637_v53 = vadd.f32 %v2540_v12, %v566_v56 }
 0x343   : > { %v1125_v6 = vsub.f32 %v1122_v3, %v2455_v42  ;;  %v765_v10 = vadd.f32 %v2630_v21, %v637_v53 }
 0x345   : > { %1195 = vrot.lane.b32.xlu1 %v1125_v6, %s2261_s15  ;;  %2123 = vmatmul.msk.f32.vlgmr.msra.gmra.mxu3 %vm365_vm0, %v1125_v6 }
 0x346   : > { %v988_v14 = vpop.f32.mrf.mxu3 }
 0x347   : > { %v989_v16 = vadd.f32 %v988_v14, %v941_v7  ;;  %v2683_v14 = vadd.f32 %v2619_v8, %v764_v49 }
 0x348   : > { %v1116_v17 = vpop.f32.mrf.mxu1 }
 0x349   : > { %v1123_v20 = vmul.f32 2.0, %v1116_v17  ;;  %v1060_v57 = vadd.f32 %v1046_v33, %v989_v16  ;;  %v560_v16 = vadd.f32 %v2506_v54, %v2502_v52 }
 0x34b   : > { %v1126_v19 = vsub.f32 %v1123_v20, %v2459_v43  ;;  %v1052_v20 = vpop.f32.mrf.mxu0 }
 0x34d   : > { %1197 = vrot.lane.b32.xlu1 %v1126_v19, %s2261_s15  ;;  %2124 = vmatmul.msk.f32.gmra.mxu3 %vm365_vm0, %v1126_v19 }
 0x34e   : > { %v991_v35 = vpop.f32.mrf.mxu3 }
 0x34f   : > { %v992_v7 = vadd.f32 %v991_v35, %v944_v34  ;;  %v635_v34 = vadd.f32 %v2525_v63, %v560_v16 }
 0x350   : > { %v1119_v22 = vpop.f32.mrf.mxu1 }
 0x351   : > { %v1124_v23 = vmul.f32 2.0, %v1119_v22  ;;  %v1061_v1 = vadd.f32 %v1049_v50, %v992_v7  ;;  %v763_v52 = vadd.f32 %v2621_v11, %v635_v34 }
 0x353   : > { %v1127_v25 = vsub.f32 %v1124_v23, %v2441_v32  ;;  %v1055_v33 = vpop.f32.mrf.mxu0 }
 0x355   : > { %1199 = vrot.lane.b32.xlu1 %v1127_v25, %s2261_s15  ;;  %2125 = vmatmul.msk.f32.gmra.mxu3 %vm365_vm0, %v1127_v25  ;;  %v2697_v25 = vadd.f32 %v2623_v15, %v765_v10 }
 0x356   : > { %v994_v39 = vpop.f32.mrf.mxu3 }
 0x357   : > { %v995_v23 = vadd.f32 %v994_v39, %v947_v36 }
 0x35e   : > { %v997_v40 = vpop.f32.mrf.mxu3 }
 0x39f   : > { %v1132_v42 = vpop.permute.xlu0 %1131 }
 0x3a0   : > { %2119 = vmatmul.msk.f32.gmra.mxu2 %vm365_vm0, %v1132_v42 }
 0x3a7   : > { %v1134_v26 = vpop.permute.xlu0 %1133 }
 0x3a8   : > { %2120 = vmatmul.msk.f32.gmra.mxu2 %vm365_vm0, %v1134_v26  ;;  %v1058_v26 = vadd.f32 %v1040_v61, %v2656_v48  ;;  %v2707_v61 = vadd.f32 %v2617_v18, %v763_v52 }
 0x3af   : > { %v1136_v28 = vpop.permute.xlu0 %1135 }
 0x3b0   : > { %2121 = vmatmul.msk.f32.gmra.mxu2 %vm365_vm0, %v1136_v28  ;;  %v1168_v60 = vpop.f32.mrf.mxu2 }
 0x3b1   : > { %v1186_v35 = vadd.f32 %v1168_v60, %v1058_v26 }
 0x3b7   : > { %v1196_v43 = vpop.permute.xlu1 %1195 }
 0x3b8   : > { %2126 = vmatmul.msk.f32.gmra.mxu3 %vm365_vm0, %v1196_v43  ;;  %v1171_v44 = vpop.f32.mrf.mxu2 }
 0x3b9   : > { %v1187_v51 = vadd.f32 %v1171_v44, %v1059_v9  ;;  %v998_v44 = vadd.f32 %v997_v40, %v950_v58 }
 0x3bf   : > { %v1198_v31 = vpop.permute.xlu1 %1197 }
 0x3c0   : > { %2127 = vmatmul.msk.f32.gmra.mxu3 %vm365_vm0, %v1198_v31  ;;  %v1174_v62 = vpop.f32.mrf.mxu2  ;;  %v1062_v31 = vadd.f32 %v1052_v20, %v995_v23 }
 0x3c1   : > { %v1188_v17 = vadd.f32 %v1174_v62, %v1060_v57  ;;  %v1063_v62 = vadd.f32 %v1055_v33, %v998_v44 }
 0x3c7   : > { %v1200_v32 = vpop.permute.xlu1 %1199 }
 0x3c8   : > { %2128 = vmatmul.msk.f32.gmra.mxu3 %vm365_vm0, %v1200_v32  ;;  %v1232_v41 = vpop.f32.mrf.mxu3 }
 0x3c9   : > { %v1250_v54 = vadd.f32 %v1232_v41, %v1186_v35 }
 0x3cb   : > { %v1256_v63 = vadd.f32 %v1250_v54, %v2707_v61 }
 0x3cd   : > { %v1265_v58 = vadd.f32 %v2691_v55, %v1256_v63 }
 0x3d0   : > { %v1235_v46 = vpop.f32.mrf.mxu3 }
 0x3d1   : > { %v1251_v2 = vadd.f32 %v1235_v46, %v1187_v51 }
 0x3d3   : > { %v1257_v4 = vadd.f32 %v1251_v2, %v2683_v14  ;;  %v2129_v2 = vmul.f32 -1.442695, %v1265_v58 }
 0x3d5   : > { %v1266_v19 = vadd.f32 %v2691_v55, %v1257_v4 }
 0x3d7   : > { %v2130_v28 = vmul.f32 -1.442695, %v1266_v19 }
 0x3d8   : > { %v1238_v3 = vpop.f32.mrf.mxu3 }
 0x3d9   : > { %v1252_v8 = vadd.f32 %v1238_v3, %v1188_v17  ;;  %2206 = vpow2.f32 %v2130_v28 }
 0x3db   : > { %v1258_v43 = vadd.f32 %v1252_v8, %v2697_v25 }
 0x3dd   : > { %v1267_v15 = vadd.f32 %v2691_v55, %v1258_v43 }
 0x3df   : > { %v2131_v60 = vmul.f32 -1.442695, %v1267_v15  ;;  %v2207_v41 = vpop.eup %2206 }
 0x3e0   : > { %v2713_v51 = vadd.f32 1.0, %v2207_v41 }
 0x3e2   : > { %vm1315_vm11 = vweird.f32 %v2713_v51 }
 0x423   : > { %v1177_v6 = vpop.f32.mrf.mxu2 }
 0x424   : > { %v1189_v59 = vadd.f32 %v1177_v6, %v1061_v1 }
 0x42b   : > { %v1180_v21 = vpop.f32.mrf.mxu2 }
 0x42c   : > { %v1190_v36 = vadd.f32 %v1180_v21, %v1062_v31 }
 0x433   : > { %v1183_v47 = vpop.f32.mrf.mxu2 }
 0x434   : > { %v1191_v9 = vadd.f32 %v1183_v47, %v1063_v62 }
 0x43b   : > { %v1241_v22 = vpop.f32.mrf.mxu3 }
 0x43c   : > { %v1253_v12 = vadd.f32 %v1241_v22, %v1189_v59 }
 0x43e   : > { %v1259_v42 = vadd.f32 %v1253_v12, %v2637_v13 }
 0x440   : > { %v1268_v32 = vadd.f32 %v2691_v55, %v1259_v42 }
 0x442   : > { %v2132_v39 = vmul.f32 -1.442695, %v1268_v32 }
 0x443   : > { %v1244_v0 = vpop.f32.mrf.mxu3 }
 0x444   : > { %2208 = vpow2.f32 %v2132_v39  ;;  %v1254_v48 = vadd.f32 %v1244_v0, %v1190_v36 }
 0x445   : > { %2210 = vpow2.f32 %v2131_v60 }
 0x446   : > { %v1260_v46 = vadd.f32 %v1254_v48, %v2645_v27 }
 0x448   : > { %v1269_v11 = vadd.f32 %v2691_v55, %v1260_v46 }
 0x44a   : > { %v2209_v5 = vpop.eup %2208  ;;  %v2133_v49 = vmul.f32 -1.442695, %v1269_v11 }
 0x44b   : > { %v1292_v40 = vadd.f32 1.0, %v2209_v5  ;;  %v1247_v18 = vpop.f32.mrf.mxu3  ;;  %v2211_v6 = vpop.eup %2210  ;;  %v1321_v5 = vand.u32 2147483648, %v2713_v51 }
 0x44c   : > { %2212 = vpow2.f32 %v2133_v49  ;;  %v1255_v50 = vadd.f32 %v1247_v18, %v1191_v9  ;;  %v2718_v10 = vadd.f32 1.0, %v2211_v6  ;;  %v1319_v49 = vand.u32 2147483647, %v2713_v51 }
 0x44d   : > { %2214 = vrcp.f32 %v1292_v40  ;;  %v1351_v20 = vand.u32 2147483648, %v1292_v40  ;;  %v1349_v8 = vand.u32 2147483647, %v1292_v40  ;;  %vm1345_vm3 = vweird.f32 %v1292_v40 }
 0x44e   : > { %v1261_v56 = vadd.f32 %v1255_v50, %v2651_v45  ;;  %2216 = vrcp.f32 %v2713_v51 }
 0x44f   : > { %2218 = vpow2.f32 %v2129_v2  ;;  %v1352_v26 = vor.u32 1.1754944e-38, %v1351_v20  ;;  %vm1350_vm5 = vcmp.eq.f32.partialorder %v1349_v8, 8.507059e+37 }
 0x450   : > { %v1270_v3 = vadd.f32 %v2691_v55, %v1261_v56 }
 0x452   : > { %v2213_v7 = vpop.eup %2212  ;;  %v2134_v53 = vmul.f32 -1.442695, %v1270_v3  ;;  %v1322_v3 = vor.u32 1.1754944e-38, %v1321_v5  ;;  %v2248_v5 = vld [vmem:[%s2962_s3 + $0x10] sm:$0xff] }
 0x453   : > { %v2215_v57 = vpop.eup %2214  ;;  %v1293_v4 = vadd.f32 1.0, %v2213_v7 }
 0x454   : > { %2220 = vpow2.f32 %v2134_v53  ;;  %v1341_v1 = vmul.f32 %v2215_v57, %v1292_v40  ;;  %v2720_v59 = vpop.eup %2216  ;;  %vm1346_vm2 = vweird.f32 %v2215_v57 }
 0x455   : > { %2222 = vrcp.f32 %v1293_v4  ;;  %v2219_v22 = vpop.eup %2218  ;;  %v1311_v16 = vmul.f32 %v2720_v59, %v2713_v51  ;;  %vm1347_vm4 = vmor %vm1345_vm3, %vm1346_vm2  ;;  %v1366_v39 = vand.u32 2147483648, %v1293_v4  ;;  %v1364_v54 = vand.u32 2147483647, %v1293_v4 }
 0x456   : > { %v1342_v17 = vsub.f32 1.0, %v1341_v1  ;;  %2224 = vrcp.f32 %v2718_v10  ;;  %v2725_v28 = vadd.f32 1.0, %v2219_v22  ;;  %vm1360_vm7 = vweird.f32 %v1293_v4 }
 0x457   : > { %v1312_v35 = vsub.f32 1.0, %v1311_v16  ;;  %v1367_v33 = vor.u32 1.1754944e-38, %v1366_v39  ;;  %vm1365_vm9 = vcmp.eq.f32.partialorder %v1364_v54, 8.507059e+37  ;;  %vm1316_vm10 = vweird.f32 %v2720_v59 }
 0x458   : > { %v1343_v19 = vmul.f32 %v2215_v57, %v1342_v17  ;;  %vm1317_vm13 = vmor %vm1315_vm11, %vm1316_vm10  ;;  %vm1320_vm2 = vcmp.eq.f32.partialorder %v1319_v49, 8.507059e+37  ;;  %v1336_v1 = vand.u32 2147483648, %v2718_v10  ;;  %v1334_v17 = vand.u32 2147483647, %v2718_v10  ;;  %v2154_v49 = vld [vmem:[%s2965_s6 + $0x10] sm:$0xff] }
 0x459   : > { %v1313_v0 = vmul.f32 %v2720_v59, %v1312_v35  ;;  %1635 = vmatpush.msra.mxu2 %v2154_v49 }
 0x45a   : > { %v2221_v23 = vpop.eup %2220  ;;  %v1344_v12 = vadd.f32 %v2215_v57, %v1343_v19  ;;  %v1337_v19 = vor.u32 1.1754944e-38, %v1336_v1 }
 0x45b   : > { %v2223_v21 = vpop.eup %2222  ;;  %v1294_v42 = vadd.f32 1.0, %v2221_v23  ;;  %v1314_v62 = vadd.f32 %v2720_v59, %v1313_v0  ;;  %v1306_v23 = vand.u32 2147483648, %v2725_v28 }
 0x45c   : > { %v1348_v43 = vsel %vm1347_vm4, %v2215_v57, %v1344_v12  ;;  %v1356_v31 = vmul.f32 %v2223_v21, %v1293_v4  ;;  %v2225_v36 = vpop.eup %2224  ;;  %vm1361_vm6 = vweird.f32 %v2223_v21  ;;  %v1304_v12 = vand.u32 2147483647, %v2725_v28 }
 0x45d   : > { %2226 = vrcp.f32 %v1294_v42  ;;  %v2727_v32 = vsel %vm1350_vm5, %v1352_v26, %v1348_v43  ;;  %v1326_v44 = vmul.f32 %v2225_v36, %v2718_v10  ;;  %vm1362_vm8 = vmor %vm1360_vm7, %vm1361_vm6  ;;  %v1381_v9 = vand.u32 2147483648, %v1294_v42 }
 0x45e   : > { %1397 = vrot.lane.b32.xlu2 %v2727_v32, %s2261_s15  ;;  %v1357_v34 = vsub.f32 1.0, %v1356_v31  ;;  %2228 = vrcp.f32 %v2725_v28  ;;  %v1379_v40 = vand.u32 2147483647, %v1294_v42  ;;  %v1318_v50 = vsel %vm1317_vm13, %v2720_v59, %v1314_v62  ;;  %v2770_v31 = vld [vmem:[%s2333_s17 + $0x28] sm:$0xff] }
 0x45f   : > { %v1327_v41 = vsub.f32 1.0, %v1326_v44  ;;  %vm1375_vm14 = vweird.f32 %v1294_v42  ;;  %v1382_v6 = vor.u32 1.1754944e-38, %v1381_v9  ;;  %v2745_v53 = vsel %vm1320_vm2, %v1322_v3, %v1318_v50  ;;  %v2245_v62 = vld [vmem:[%s2961_s2 + $0x8] sm:$0xff] }
 0x460   : > { %v1358_v52 = vmul.f32 %v2223_v21, %v1357_v34  ;;  %vm1380_vm3 = vcmp.eq.f32.partialorder %v1379_v40, 8.507059e+37  ;;  %vm1331_vm4 = vweird.f32 %v2225_v36  ;;  %vm1330_vm5 = vweird.f32 %v2718_v10  ;;  %v2141_v9 = vld [vmem:[%s2965_s6 + $0x8] sm:$0xff] }
 0x461   : > { %v1328_v2 = vmul.f32 %v2225_v36, %v1327_v41  ;;  %vm1332_vm6 = vmor %vm1330_vm5, %vm1331_vm4  ;;  %vm1335_vm7 = vcmp.eq.f32.partialorder %v1334_v17, 8.507059e+37  ;;  %v1307_v16 = vor.u32 1.1754944e-38, %v1306_v23  ;;  %vm1305_vm11 = vcmp.eq.f32.partialorder %v1304_v12, 8.507059e+37  ;;  %v2247_v41 = vld [vmem:[%s2961_s2 + $0x10] sm:$0xff] }
 0x462   : > { %v1359_v15 = vadd.f32 %v2223_v21, %v1358_v52 }
 0x463   : > { %v2227_v48 = vpop.eup %2226  ;;  %v1329_v57 = vadd.f32 %v2225_v36, %v1328_v2 }
 0x464   : > { %v1363_v46 = vsel %vm1362_vm8, %v2223_v21, %v1359_v15  ;;  %v1371_v63 = vmul.f32 %v2227_v48, %v1294_v42  ;;  %v2229_v47 = vpop.eup %2228  ;;  %vm1376_vm12 = vweird.f32 %v2227_v48 }
 0x465   : > { %v2734_v60 = vsel %vm1365_vm9, %v1367_v33, %v1363_v46  ;;  %v1296_v18 = vmul.f32 %v2229_v47, %v2725_v28  ;;  %vm1377_vm15 = vmor %vm1375_vm14, %vm1376_vm12  ;;  %v1333_v59 = vsel %vm1332_vm6, %v2225_v36, %v1329_v57  ;;  %vm1301_vm8 = vweird.f32 %v2229_v47 }
 0x466   : > { %1399 = vrot.lane.b32.xlu1 %v2734_v60, %s2261_s15  ;;  %v1372_v11 = vsub.f32 1.0, %v1371_v63  ;;  %v2756_v8 = vsel %vm1335_vm7, %v1337_v19, %v1333_v59  ;;  %vm1300_vm9 = vweird.f32 %v2725_v28 }
 0x467   : > { %v1297_v4 = vsub.f32 1.0, %v1296_v18  ;;  %vm1302_vm10 = vmor %vm1300_vm9, %vm1301_vm8 }
 0x468   : > { %v1373_v58 = vmul.f32 %v2227_v48, %v1372_v11  ;;  %v2246_v11 = vld [vmem:[%s2962_s3 + $0x8] sm:$0xff] }
 0x469   : > { %v1298_v20 = vmul.f32 %v2229_v47, %v1297_v4  ;;  %v2167_v4 = vld [vmem:[%s2965_s6 + $0x18] sm:$0xff] }
 0x46a   : > { %v1374_v56 = vadd.f32 %v2227_v48, %v1373_v58 }
 0x46b   : > { %v1299_v22 = vadd.f32 %v2229_v47, %v1298_v20 }
 0x46c   : > { %v1378_v7 = vsel %vm1377_vm15, %v2227_v48, %v1374_v56 }
 0x46d   : > { %v2747_v51 = vsel %vm1380_vm3, %v1382_v6, %v1378_v7  ;;  %v1303_v10 = vsel %vm1302_vm10, %v2229_v47, %v1299_v22  ;;  %v2244_v47 = vld [vmem:[%s2962_s3] sm:$0xff] }
 0x46e   : > { %1393 = vrot.lane.b32.xlu1 %v2745_v53, %s2261_s15  ;;  %1401 = vrot.lane.b32.xlu0 %v2747_v51, %s2261_s15  ;;  %v2763_v21 = vsel %vm1305_vm11, %v1307_v16, %v1303_v10  ;;  %v2174_v22 = vld [vmem:[%s2965_s6 + $0x20] sm:$0xff] }
 0x476   : > { %1395 = vrot.lane.b32.xlu0 %v2756_v8, %s2261_s15 }
 0x47e   : > { %1391 = vrot.lane.b32.xlu0 %v2763_v21, %s2261_s15 }
 0x4b8   : > { %v1398_v28 = vpop.permute.xlu2 %1397 }
 0x4b9   : > { %v1412_v35 = vmul.f32 %v2427_v29, %v1398_v28 }
 0x4d8   : > { %v1400_v42 = vpop.permute.xlu1 %1399 }
 0x4d9   : > { %v1413_v26 = vmul.f32 %v2411_v24, %v1400_v42 }
 0x4db   : > { %1420 = vrot.lane.b32.xlu1 %v1413_v26, %s2260_s12 }
 0x4e0   : > { %v1402_v43 = vpop.permute.xlu0 %1401  ;;  %v1394_v44 = vpop.permute.xlu1 %1393 }
 0x4e1   : > { %v1414_v34 = vmul.f32 %v2770_v31, %v1402_v43 }
 0x4e3   : > { %1422 = vrot.lane.b32.xlu2 %v1414_v34, %s2260_s12 }
 0x4e8   : > { %v1396_v36 = vpop.permute.xlu0 %1395 }
 0x4e9   : > { %v1411_v39 = vmul.f32 %v1396_v36, %v2437_v30  ;;  %v1410_v30 = vmul.f32 %v1394_v44, %v2451_v38  ;;  %v2243_v38 = vld [vmem:[%s2961_s2] sm:$0xff] }
 0x4eb   : > { %1418 = vrot.lane.b32.xlu2 %v1412_v35, %s2260_s12 }
 0x4f0   : > { %v1392_v15 = vpop.permute.xlu0 %1391 }
 0x4f1   : > { %v1409_v0 = vmul.f32 %v1392_v15, %v2448_v37  ;;  %v1439_v37 = vld [vmem:[%s2965_s6] sm:$0xff] }
 0x53d   : > { %v1423_v52 = vpop.permute.xlu2 %1422 }
 0x53e   : > { %v2778_v54 = vsel %vm365_vm0, %v1411_v39, %v1423_v52 }
 0x53f   : > { %1453 = vmatpush.msra.mxu0 %v2778_v54  ;;  %1479 = vmatpush.msrb.mxu1 %v2778_v54 }
 0x545   : > { %v1419_v48 = vpop.permute.xlu2 %1418 }
 0x546   : > { %v2784_v33 = vsel %vm365_vm0, %v1409_v0, %v1419_v48 }
 0x547   : > { %1433 = vrot.lane.b32.xlu1 %v2784_v33, %s2261_s15 }
 0x54d   : > { %v1421_v46 = vpop.permute.xlu1 %1420 }
 0x54e   : > { %v2790_v63 = vsel %vm365_vm0, %v1410_v30, %v1421_v46 }
 0x54f   : > { %1454 = vmatpush.msra.mxu0 %v2790_v63  ;;  %1480 = vmatpush.msrb.mxu1 %v2790_v63 }
 0x551   : > { %1455 = vmatpush.msra.mxu0 %v2784_v33  ;;  %1481 = vmatpush.msrb.mxu1 %v2784_v33 }
 0x552   : > { %2135 = vmatmul.msk.f32.vlgmr.msra.gmra.mxu0 %vm401_vm1, %v2243_v38  ;;  %2138 = vmatmul.msk.f32.vlgmr.msrb.gmra.mxu1 %vm401_vm1, %v2244_v47 }
 0x553   : > { %1577 = vmatpush.msra.mxu1 %v1439_v37  ;;  %1530 = vmatpush.msrb.mxu0 %v2141_v9 }
 0x555   : > { %1763 = vmatpush.msra.mxu0 %v2167_v4  ;;  %1827 = vmatpush.msrb.mxu1 %v2174_v22 }
 0x55a   : > { %2136 = vmatmul.msk.f32.gmra.mxu0 %vm401_vm1, %v2245_v62  ;;  %2139 = vmatmul.msk.f32.gmra.mxu1 %vm401_vm1, %v2246_v11 }
 0x562   : > { %2137 = vmatmul.msk.f32.gmra.mxu0 %vm401_vm1, %v2247_v41  ;;  %2140 = vmatmul.msk.f32.gmra.mxu1 %vm401_vm1, %v2248_v5 }
 0x56a   : > { %2148 = vmatmul.msk.f32.vlgmr.msra.gmra.mxu1 %vm365_vm0, %v2784_v33 }
 0x572   : > { %2149 = vmatmul.msk.f32.gmra.mxu1 %vm365_vm0, %v2790_v63 }
 0x57a   : > { %2150 = vmatmul.msk.f32.gmra.mxu1 %vm365_vm0, %v2778_v54 }
 0x5b9   : > { %v1434_v58 = vpop.permute.xlu1 %1433 }
 0x5ba   : > { %2151 = vmatmul.msk.f32.gmra.mxu1 %vm365_vm0, %v1434_v58 }
 0x5cf   : > { %v1457_v40 = vpop.f32.mrf.mxu0  ;;  %v1483_v18 = vpop.f32.mrf.mxu1 }
 0x5d0   : > { %2155 = vmatmul.msk.f32.vlgmr.msra.gmra.mxu2 %vm365_vm0, %v1483_v18  ;;  %1495 = vrot.lane.b32.xlu0 %v1457_v40, %s2261_s15 }
 0x5d1   : > { %2142 = vmatmul.msk.f32.vlgmr.msrb.gmra.mxu0 %vm365_vm0, %v1457_v40 }
 0x5d7   : > { %v1460_v50 = vpop.f32.mrf.mxu0  ;;  %v1486_v56 = vpop.f32.mrf.mxu1 }
 0x5d8   : > { %2156 = vmatmul.msk.f32.gmra.mxu2 %vm365_vm0, %v1486_v56  ;;  %1435 = vrot.lane.b32.xlu0 %v2790_v63, %s2261_s15 }
 0x5d9   : > { %1497 = vrot.lane.b32.xlu2 %v1460_v50, %s2261_s15  ;;  %2143 = vmatmul.msk.f32.gmra.mxu0 %vm365_vm0, %v1460_v50 }
 0x5df   : > { %v1463_v2 = vpop.f32.mrf.mxu0  ;;  %v1489_v3 = vpop.f32.mrf.mxu1 }
 0x5e0   : > { %2157 = vmatmul.msk.f32.gmra.mxu2 %vm365_vm0, %v1489_v3  ;;  %1600 = vrot.lane.b32.xlu0 %v1483_v18, %s2261_s15 }
 0x5e1   : > { %1437 = vrot.lane.b32.xlu2 %v2778_v54, %s2261_s15  ;;  %1499 = vrot.lane.b32.xlu1 %v1463_v2, %s2261_s15 }
 0x5e2   : > { %2144 = vmatmul.msk.f32.gmra.mxu0 %vm365_vm0, %v1463_v2  ;;  %1674 = vmatpush.msrb.mxu3 %v1463_v2 }
 0x5e4   : > { %1675 = vmatpush.msrb.mxu3 %v1460_v50 }
 0x5e6   : > { %1676 = vmatpush.msrb.mxu3 %v1457_v40 }
 0x5e7   : > { %2161 = vmatmul.msk.f32.vlgmr.msrb.gmra.mxu3 %vm401_vm1, %v2243_v38 }
 0x5e8   : > { %1706 = vmatpush.msra.mxu3 %v1489_v3 }
 0x5e9   : > { %1602 = vrot.lane.b32.xlu1 %v1486_v56, %s2261_s15 }
 0x5ea   : > { %1707 = vmatpush.msra.mxu3 %v1486_v56 }
 0x5ec   : > { %1708 = vmatpush.msra.mxu3 %v1483_v18 }
 0x5ef   : > { %2162 = vmatmul.msk.f32.gmra.mxu3 %vm401_vm1, %v2245_v62 }
 0x5f1   : > { %1604 = vrot.lane.b32.xlu1 %v1489_v3, %s2261_s15 }
 0x5f7   : > { %2163 = vmatmul.msk.f32.gmra.mxu3 %vm401_vm1, %v2247_v41 }
 0x5ff   : > { %2164 = vmatmul.msk.f32.vlgmr.msra.gmra.mxu3 %vm401_vm1, %v2244_v47 }
 0x607   : > { %2165 = vmatmul.msk.f32.gmra.mxu3 %vm401_vm1, %v2246_v11 }
 0x60f   : > { %2166 = vmatmul.msk.f32.gmra.mxu3 %vm401_vm1, %v2248_v5 }
 0x633   : > { %v1498_v7 = vpop.permute.xlu2 %1497 }
 0x63b   : > { %v1438_v1 = vpop.permute.xlu2 %1437 }
 0x642   : > { %v1496_v6 = vpop.permute.xlu0 %1495 }
 0x643   : > { %2145 = vmatmul.msk.f32.gmra.mxu0 %vm365_vm0, %v1496_v6 }
 0x64a   : > { %v1436_v57 = vpop.permute.xlu0 %1435 }
 0x64b   : > { %2146 = vmatmul.msk.f32.gmra.mxu0 %vm365_vm0, %v1498_v7  ;;  %2152 = vmatmul.msk.f32.gmra.mxu1 %vm365_vm0, %v1436_v57 }
 0x64e   : > { %v1532_v46 = vpop.f32.mrf.mxu0 }
 0x652   : > { %v1601_v17 = vpop.permute.xlu0 %1600 }
 0x653   : > { %v1500_v59 = vpop.permute.xlu1 %1499  ;;  %2153 = vmatmul.msk.f32.gmra.mxu1 %vm365_vm0, %v1438_v1  ;;  %2158 = vmatmul.msk.f32.gmra.mxu2 %vm365_vm0, %v1601_v17  ;;  %v1637_v3 = vpop.f32.mrf.mxu2 }
 0x654   : > { %2147 = vmatmul.msk.f32.gmra.mxu0 %vm365_vm0, %v1500_v59 }
 0x656   : > { %v1535_v38 = vpop.f32.mrf.mxu0 }
 0x65b   : > { %v1603_v20 = vpop.permute.xlu1 %1602  ;;  %v1640_v17 = vpop.f32.mrf.mxu2 }
 0x65c   : > { %2159 = vmatmul.msk.f32.gmra.mxu2 %vm365_vm0, %v1603_v20 }
 0x65f   : > { %v1538_v62 = vpop.f32.mrf.mxu0 }
 0x663   : > { %v1605_v19 = vpop.permute.xlu1 %1604 }
 0x664   : > { %2160 = vmatmul.msk.f32.gmra.mxu2 %vm365_vm0, %v1605_v19 }
 0x66a   : > { %v1678_v23 = vpop.f32.mrf.mxu3 }
 0x66b   : > { %v1687_v12 = vmul.f32 2.0, %v1678_v23 }
 0x66d   : > { %v1690_v10 = vsub.f32 %v1687_v12, %v2784_v33 }
 0x66f   : > { %1728 = vrot.lane.b32.xlu2 %v1690_v10, %s2261_s15  ;;  %2168 = vmatmul.msk.f32.vlgmr.msra.gmra.mxu0 %vm365_vm0, %v1690_v10 }
 0x672   : > { %v1681_v16 = vpop.f32.mrf.mxu3 }
 0x673   : > { %v1688_v42 = vmul.f32 2.0, %v1681_v16 }
 0x675   : > { %v1691_v26 = vsub.f32 %v1688_v42, %v2790_v63 }
 0x677   : > { %1730 = vrot.lane.b32.xlu2 %v1691_v26, %s2261_s15  ;;  %2169 = vmatmul.msk.f32.gmra.mxu0 %vm365_vm0, %v1691_v26  ;;  %v1643_v26 = vpop.f32.mrf.mxu2 }
 0x67a   : > { %v1684_v43 = vpop.f32.mrf.mxu3 }
 0x67b   : > { %v1689_v34 = vmul.f32 2.0, %v1684_v43 }
 0x67d   : > { %v1692_v28 = vsub.f32 %v1689_v34, %v2778_v54 }
 0x67f   : > { %1732 = vrot.lane.b32.xlu1 %v1692_v28, %s2261_s15  ;;  %2170 = vmatmul.msk.f32.gmra.mxu0 %vm365_vm0, %v1692_v28 }
 0x682   : > { %v1710_v35 = vpop.f32.mrf.mxu3 }
 0x683   : > { %v1719_v36 = vmul.f32 2.0, %v1710_v35 }
 0x685   : > { %v1722_v39 = vsub.f32 %v1719_v36, %v2784_v33  ;;  %v1579_v33 = vpop.f32.mrf.mxu1 }
 0x686   : > { %v1580_v7 = vadd.f32 %v1579_v33, %v1532_v46 }
 0x687   : > { %1792 = vrot.lane.b32.xlu0 %v1722_v39, %s2261_s15  ;;  %2175 = vmatmul.msk.f32.vlgmr.msrb.gmra.mxu1 %vm365_vm0, %v1722_v39 }
 0x688   : > { %v1655_v57 = vadd.f32 %v1637_v3, %v1580_v7 }
 0x68a   : > { %v1713_v52 = vpop.f32.mrf.mxu3 }
 0x68b   : > { %v1720_v15 = vmul.f32 2.0, %v1713_v52 }
 0x68d   : > { %v1723_v0 = vsub.f32 %v1720_v15, %v2790_v63  ;;  %v1582_v37 = vpop.f32.mrf.mxu1 }
 0x68e   : > { %v1583_v22 = vadd.f32 %v1582_v37, %v1535_v38 }
 0x68f   : > { %1794 = vrot.lane.b32.xlu0 %v1723_v0, %s2261_s15  ;;  %2176 = vmatmul.msk.f32.gmra.mxu1 %vm365_vm0, %v1723_v0 }
 0x690   : > { %v1656_v23 = vadd.f32 %v1640_v17, %v1583_v22 }
 0x692   : > { %v1716_v44 = vpop.f32.mrf.mxu3 }
 0x693   : > { %v1721_v48 = vmul.f32 2.0, %v1716_v44 }
 0x695   : > { %v1724_v30 = vsub.f32 %v1721_v48, %v2778_v54  ;;  %v1585_v47 = vpop.f32.mrf.mxu1 }
 0x696   : > { %v1586_v43 = vadd.f32 %v1585_v47, %v1538_v62 }
 0x697   : > { %1796 = vrot.lane.b32.xlu2 %v1724_v30, %s2261_s15  ;;  %2177 = vmatmul.msk.f32.gmra.mxu1 %vm365_vm0, %v1724_v30  ;;  %s2262_s15 = smov 16  }
 0x698   : > { %v1657_v28 = vadd.f32 %v1643_v26, %v1586_v43 }
 0x69d   : > { %v1588_v11 = vpop.f32.mrf.mxu1 }
 0x6c0   : > { %v1541_v63 = vpop.f32.mrf.mxu0 }
 0x6c1   : > { %v1589_v41 = vadd.f32 %v1588_v11, %v1541_v63 }
 0x6c8   : > { %v1544_v5 = vpop.f32.mrf.mxu0  ;;  %v1591_v9 = vpop.f32.mrf.mxu1 }
 0x6c9   : > { %v1729_v49 = vpop.permute.xlu2 %1728  ;;  %v1592_v58 = vadd.f32 %v1591_v9, %v1544_v5 }
 0x6ca   : > { %2171 = vmatmul.msk.f32.gmra.mxu0 %vm365_vm0, %v1729_v49 }
 0x6d0   : > { %v1594_v54 = vpop.f32.mrf.mxu1 }
 0x6d1   : > { %v1731_v40 = vpop.permute.xlu2 %1730  ;;  %v1547_v18 = vpop.f32.mrf.mxu0 }
 0x6d2   : > { %v1595_v50 = vadd.f32 %v1594_v54, %v1547_v18  ;;  %2172 = vmatmul.msk.f32.gmra.mxu0 %vm365_vm0, %v1731_v40 }
 0x6d6   : > { %v1646_v52 = vpop.f32.mrf.mxu2 }
 0x6d7   : > { %v1658_v0 = vadd.f32 %v1646_v52, %v1589_v41 }
 0x6df   : > { %v1649_v48 = vpop.f32.mrf.mxu2 }
 0x6e0   : > { %v1659_v47 = vadd.f32 %v1649_v48, %v1592_v58 }
 0x6e7   : > { %v1652_v49 = vpop.f32.mrf.mxu2 }
 0x6ec   : > { %v1765_v6 = vpop.f32.mrf.mxu0 }
 0x6ed   : > { %v1783_v1 = vadd.f32 %v1765_v6, %v1655_v57 }
 0x6f1   : > { %v1733_v56 = vpop.permute.xlu1 %1732  ;;  %v1797_v12 = vpop.permute.xlu2 %1796 }
 0x6f2   : > { %2173 = vmatmul.msk.f32.gmra.mxu0 %vm365_vm0, %v1733_v56  ;;  %v1660_v56 = vadd.f32 %v1652_v49, %v1595_v50 }
 0x6f4   : > { %v1768_v19 = vpop.f32.mrf.mxu0 }
 0x6f5   : > { %v1784_v10 = vadd.f32 %v1768_v19, %v1656_v23 }
 0x6f9   : > { %v1793_v2 = vpop.permute.xlu0 %1792 }
 0x6fa   : > { %2178 = vmatmul.msk.f32.gmra.mxu1 %vm365_vm0, %v1793_v2 }
 0x6fc   : > { %v1771_v34 = vpop.f32.mrf.mxu0 }
 0x6fd   : > { %v1785_v35 = vadd.f32 %v1771_v34, %v1657_v28 }
 0x701   : > { %v1795_v4 = vpop.permute.xlu0 %1794 }
 0x702   : > { %2179 = vmatmul.msk.f32.gmra.mxu1 %vm365_vm0, %v1795_v4 }
 0x704   : > { %v1829_v59 = vpop.f32.mrf.mxu1 }
 0x705   : > { %v1847_v20 = vadd.f32 %v1829_v59, %v1783_v1  ;;  %v1903_v1 = vsub.f32 1.0, %v2756_v8 }
 0x707   : > { %1859 = vrot.lane.b32.xlu0 %v1847_v20, %s2262_s15  ;;  %v2249_v20 = vld [vmem:[%s2333_s17 + $0x10] sm:$0xff] }
 0x708   : > { %v1897_v19 = vmul.f32 %v2249_v20, %v2756_v8 }
 0x70a   : > { %2180 = vmatmul.msk.f32.gmra.mxu1 %vm365_vm0, %v1797_v12 }
 0x70c   : > { %v1832_v16 = vpop.f32.mrf.mxu1 }
 0x70d   : > { %v1848_v42 = vadd.f32 %v1832_v16, %v1784_v10  ;;  %v1901_v16 = vsub.f32 1.0, %v2763_v21 }
 0x70f   : > { %1861 = vrot.lane.b32.xlu1 %v1848_v42, %s2262_s15 }
 0x714   : > { %v1835_v36 = vpop.f32.mrf.mxu1 }
 0x715   : > { %v1849_v39 = vadd.f32 %v1835_v36, %v1785_v35 }
 0x717   : > { %1863 = vrot.lane.b32.xlu2 %v1849_v39, %s2262_s15 }
 0x747   : > { %v1774_v15 = vpop.f32.mrf.mxu0 }
 0x748   : > { %v1786_v44 = vadd.f32 %v1774_v15, %v1658_v0 }
 0x74f   : > { %v1777_v38 = vpop.f32.mrf.mxu0 }
 0x750   : > { %v1787_v11 = vadd.f32 %v1777_v38, %v1659_v47  ;;  %v1898_v38 = vmul.f32 %v2427_v29, %v2727_v32 }
 0x76f   : > { %v1780_v40 = vpop.f32.mrf.mxu0 }
 0x770   : > { %v1788_v2 = vadd.f32 %v1780_v40, %v1660_v56 }
 0x771   : > { %v1864_v5 = vpop.permute.xlu2 %1863 }
 0x777   : > { %v1838_v30 = vpop.f32.mrf.mxu1 }
 0x778   : > { %v1850_v33 = vadd.f32 %v1838_v30, %v1786_v44  ;;  %v1906_v44 = vsub.f32 1.0, %v2747_v51  ;;  %v1900_v30 = vmul.f32 %v2770_v31, %v2747_v51  ;;  %v1899_v51 = vmul.f32 %v2411_v24, %v2734_v60 }
 0x779   : > { %v1860_v46 = vpop.permute.xlu0 %1859 }
 0x77a   : > { %v1877_v37 = vadd.f32 %v1860_v46, %v2707_v61  ;;  %1865 = vrot.lane.b32.xlu0 %v1850_v33, %s2262_s15  ;;  %v1879_v61 = vadd.f32 %v1864_v5, %v2697_v25 }
 0x77c   : > { %v1883_v62 = vadd.f32 %v2691_v55, %v1877_v37  ;;  %v1885_v3 = vadd.f32 %v2691_v55, %v1879_v61 }
 0x77e   : > { %2230 = vtanh.f32 %v1883_v62 }
 0x77f   : > { %v1841_v63 = vpop.f32.mrf.mxu1 }
 0x780   : > { %v1851_v9 = vadd.f32 %v1841_v63, %v1787_v11  ;;  %v1905_v11 = vsub.f32 1.0, %v2734_v60 }
 0x781   : > { %v1862_v41 = vpop.permute.xlu1 %1861 }
 0x782   : > { %v1878_v54 = vadd.f32 %v1862_v41, %v2683_v14  ;;  %1867 = vrot.lane.b32.xlu1 %v1851_v9, %s2262_s15 }
 0x784   : > { %v2231_v18 = vpop.eup %2230  ;;  %v1884_v58 = vadd.f32 %v2691_v55, %v1878_v54 }
 0x785   : > { %1913 = vrot.lane.b32.xlu0 %v2231_v18, %s2263_s19 }
 0x786   : > { %2232 = vtanh.f32 %v1884_v58 }
 0x787   : > { %v1844_v6 = vpop.f32.mrf.mxu1  ;;  %2234 = vtanh.f32 %v1885_v3 }
 0x788   : > { %v1852_v7 = vadd.f32 %v1844_v6, %v1788_v2 }
 0x78a   : > { %1869 = vrot.lane.b32.xlu2 %v1852_v7, %s2262_s15 }
 0x78c   : > { %v2233_v14 = vpop.eup %2232 }
 0x78d   : > { %1915 = vrot.lane.b32.xlu1 %v2233_v14, %s2263_s19  ;;  %v2235_v25 = vpop.eup %2234 }
 0x792   : > { %1917 = vrot.lane.b32.xlu2 %v2235_v25, %s2263_s19 }
 0x7e4   : > { %v1870_v50 = vpop.permute.xlu2 %1869 }
 0x7e5   : > { %v1882_v57 = vadd.f32 %v1870_v50, %v2651_v45 }
 0x7e7   : > { %v1888_v4 = vadd.f32 %v2691_v55, %v1882_v57 }
 0x7e9   : > { %2236 = vtanh.f32 %v1888_v4 }
 0x7ec   : > { %v1866_v17 = vpop.permute.xlu0 %1865  ;;  %v1918_v59 = vpop.permute.xlu2 %1917 }
 0x7ed   : > { %v1880_v22 = vadd.f32 %v1866_v17, %v2637_v13  ;;  %v1933_v23 = vmul.f32 %v1918_v59, %v1903_v1 }
 0x7ef   : > { %v2237_v45 = vpop.eup %2236  ;;  %v1886_v12 = vadd.f32 %v2691_v55, %v1880_v22  ;;  %v1939_v10 = vadd.f32 %v1933_v23, %v1897_v19 }
 0x7f0   : > { %1923 = vrot.lane.b32.xlu2 %v2237_v45, %s2263_s19 }
 0x7f1   : > { %2238 = vtanh.f32 %v1886_v12  ;;  %1945 = vst.msk [vmem:[%s2921_s22 + $0x10] sm:$0xff] %vm365_vm0, %v1939_v10 }
 0x7f4   : > { %v1868_v8 = vpop.permute.xlu1 %1867 }
 0x7f5   : > { %v1881_v13 = vadd.f32 %v1868_v8, %v2645_v27  ;;  %v1902_v27 = vsub.f32 1.0, %v2745_v53 }
 0x7f7   : > { %v2239_v42 = vpop.eup %2238  ;;  %v1887_v26 = vadd.f32 %v2691_v55, %v1881_v13  ;;  %v1914_v43 = vpop.permute.xlu0 %1913 }
 0x7f8   : > { %v2250_v34 = vld [vmem:[%s2333_s17] sm:$0xff]  ;;  %v1931_v35 = vmul.f32 %v1914_v43, %v1901_v16  ;;  %1919 = vrot.lane.b32.xlu0 %v2239_v42, %s2263_s19 }
 0x7f9   : > { %v1895_v28 = vmul.f32 %v2250_v34, %v2763_v21  ;;  %2240 = vtanh.f32 %v1887_v26 }
 0x7fb   : > { %v1937_v36 = vadd.f32 %v1931_v35, %v1895_v28 }
 0x7fd   : > { %1943 = vst.msk [vmem:[%s2921_s22] sm:$0xff] %vm365_vm0, %v1937_v36 }
 0x7ff   : > { %v2241_v39 = vpop.eup %2240  ;;  %v1916_v52 = vpop.permute.xlu1 %1915 }
 0x800   : > { %v1932_v0 = vmul.f32 %v1916_v52, %v1902_v27  ;;  %1921 = vrot.lane.b32.xlu1 %v2241_v39, %s2263_s19 }
 0x804   : > { %v2251_v15 = vld [vmem:[%s2333_s17 + $0x8] sm:$0xff] }
 0x805   : > { %v1896_v55 = vmul.f32 %v2251_v15, %v2745_v53  ;;  %v1904_v53 = vsub.f32 1.0, %v2727_v32 }
 0x807   : > { %v1938_v21 = vadd.f32 %v1932_v0, %v1896_v55 }
 0x809   : > { %1944 = vst.msk [vmem:[%s2921_s22 + $0x8] sm:$0xff] %vm365_vm0, %v1938_v21 }
 0x84a   : > { %v1924_v48 = vpop.permute.xlu2 %1923 }
 0x84b   : > { %v1936_v33 = vmul.f32 %v1924_v48, %v1906_v44 }
 0x84d   : > { %v1942_v46 = vadd.f32 %v1936_v33, %v1900_v30 }
 0x84f   : > { %2183 = vst.msk [vmem:[%s2921_s22 + $0x28] sm:$0xff] %vm365_vm0, %v1942_v46 }
 0x86a   : > { %v1920_v37 = vpop.permute.xlu0 %1919 }
 0x86b   : > { %v1934_v47 = vmul.f32 %v1920_v37, %v1904_v53 }
 0x86d   : > { %v1940_v62 = vadd.f32 %v1934_v47, %v1898_v38 }
 0x86f   : > { %2181 = vst.msk [vmem:[%s2921_s22 + $0x18] sm:$0xff] %vm365_vm0, %v1940_v62 }
 0x872   : > { %v1922_v63 = vpop.permute.xlu1 %1921 }
 0x873   : > { %v1935_v31 = vmul.f32 %v1922_v63, %v1905_v11 }
 0x875   : > { %v1941_v5 = vadd.f32 %v1935_v31, %v1899_v51 }
 0x877   : > { %2182 = vst.msk [vmem:[%s2921_s22 + $0x20] sm:$0xff] %vm365_vm0, %v1941_v5 }
 0x878 PF: > { %s18_s27 = sadd.s32 1, %s2258_s27  }
 0x879   : > { %p15_p4 = scmp.ge.s32.totalorder %s18_s27, 4  }
 0x87b   :  { %17 = sbr.rel (!%p15_p4) target bundleno = 1 (0x1), region = 100 }

</bundles_post_ra>
